<compile_context>
chip_gen: v5e
topology: v5e:2x2
jax: 0.10.0
libtpu: 0.0.40
codegen_flags: <defaults>
</compile_context>

<pallas_src>
import math
import jax
import jax.numpy as jnp
from jax import lax
from jax.experimental import pallas as pl
from jax.experimental.pallas import tpu as pltpu

D_MODEL = 128                 # d_model (module default, hard-coded in forward)
N_HEAD = 8                    # nhead
HEAD_DIM = D_MODEL // N_HEAD
FFN = 512                     # dim_feedforward (module default)
NKEY = 9                      # 3x3 neighbourhood keys
LN_EPS = 1e-5


# ---------------------------------------------------------------------------
# Pallas kernel: TransformerDecoderLayer2.forward_post (eval, no dropout)
#   tgt:    (N, 128)    one query token per detection (f32)
#   memory: (9, N, 128) 3x3-neighbourhood / box-pooled features (bf16)
# ---------------------------------------------------------------------------
def decoder_kernel(q_ref, mem_ref,
                   wq_ref, bq_ref, wkv_ref, bkv_ref,
                   wo_ref, bo_ref, n2w_ref, n2b_ref,
                   w1_ref, b1_ref, w2_ref, b2_ref, n3w_ref, n3b_ref,
                   hmask_ref, hmaskT_ref, out_ref):
    f32 = jnp.float32
    bf16 = jnp.bfloat16
    tn = q_ref.shape[0]

    q_f32 = q_ref[...]                                       # (tn, D) f32
    q_bf = q_f32.astype(bf16)
    mem2d = mem_ref[...].reshape(NKEY * tn, D_MODEL)         # (9*tn, D) bf16

    # Q projection (1/sqrt(head_dim) already folded into wq/bq by the wrapper)
    qp = jnp.dot(q_bf, wq_ref[...], preferred_element_type=f32) + bq_ref[...]

    # fused K/V projection for all 9 keys: (9*tn, D) @ (D, 2D)
    kv = jnp.dot(mem2d, wkv_ref[...], preferred_element_type=f32) + bkv_ref[...]
    kp = kv[:, :D_MODEL]                                     # (9*tn, D)
    vp = kv[:, D_MODEL:]                                     # (9*tn, D)

    # per-head scores for all 9 keys with one matmul against the lane->head
    # one-hot mask: (9*tn, D) @ (D, H) -> (9*tn, H)
    qk = (kp.reshape(NKEY, tn, D_MODEL) * qp[None]).reshape(NKEY * tn, D_MODEL)
    s3 = jnp.dot(qk, hmask_ref[...],
                 preferred_element_type=f32).reshape(NKEY, tn, N_HEAD)

    # softmax over the 9 keys
    m = jnp.max(s3, axis=0)                                  # (tn, H)
    e3 = jnp.exp(s3 - m[None])                               # (9, tn, H)
    den = jnp.sum(e3, axis=0)                                # (tn, H)
    inv = pl.reciprocal(den, approx=True)
    a3 = e3 * inv[None]                                      # (9, tn, H)

    # broadcast head weights back onto the 128 lanes with one matmul, then
    # contract over the 9 keys.
    a_l = jnp.dot(a3.reshape(NKEY * tn, N_HEAD), hmaskT_ref[...],
                  preferred_element_type=f32)                # (9*tn, D)
    ctx = jnp.sum((a_l * vp).reshape(NKEY, tn, D_MODEL), axis=0)   # (tn, D)

    attn = jnp.dot(ctx.astype(bf16), wo_ref[...],
                   preferred_element_type=f32) + bo_ref[...]

    # residual + LayerNorm (norm2), f32
    t = q_f32 + attn
    mu = jnp.mean(t, axis=-1, keepdims=True)
    var = jnp.mean((t - mu) ** 2, axis=-1, keepdims=True)
    t = (t - mu) * lax.rsqrt(var + LN_EPS) * n2w_ref[...] + n2b_ref[...]

    # FFN: linear1 -> relu -> linear2
    h1 = jnp.maximum(jnp.dot(t.astype(bf16), w1_ref[...],
                             preferred_element_type=f32) + b1_ref[...], 0.0)
    h2 = jnp.dot(h1.astype(bf16), w2_ref[...],
                 preferred_element_type=f32) + b2_ref[...]

    # residual + LayerNorm (norm3)
    t2 = t + h2
    mu2 = jnp.mean(t2, axis=-1, keepdims=True)
    var2 = jnp.mean((t2 - mu2) ** 2, axis=-1, keepdims=True)
    out_ref[...] = (t2 - mu2) * lax.rsqrt(var2 + LN_EPS) * n3w_ref[...] + n3b_ref[...]


def run_decoder(q, mem, p, tn=256):
    """q: (N, D) f32, mem: (NKEY, N, D) f32 -> (N, D) f32."""
    N, D = q.shape
    bf16 = jnp.bfloat16
    scale = 1.0 / math.sqrt(HEAD_DIM)

    wq = (p['in_proj_w'][:D] * scale).T.astype(bf16)            # scale folded
    wkv = p['in_proj_w'][D:].T.astype(bf16)                     # (D, 2D)
    bq = (p['in_proj_b'][:D] * scale).reshape(1, D)
    bkv = p['in_proj_b'][D:].reshape(1, 2 * D)
    wo = p['out_proj_w'].T.astype(bf16)
    bo = p['out_proj_b'].reshape(1, D)
    w1 = p['lin1_w'].T.astype(bf16)                             # (D, FFN)
    b1 = p['lin1_b'].reshape(1, FFN)
    w2 = p['lin2_w'].T.astype(bf16)                             # (FFN, D)
    b2 = p['lin2_b'].reshape(1, D)
    n2w = p['norm2_w'].reshape(1, D)
    n2b = p['norm2_b'].reshape(1, D)
    n3w = p['norm3_w'].reshape(1, D)
    n3b = p['norm3_b'].reshape(1, D)

    lane = jnp.arange(D)
    hmask = (lane[:, None] // HEAD_DIM ==
             jnp.arange(N_HEAD)[None, :]).astype(jnp.float32)   # (D, H)
    hmaskT = hmask.T                                            # (H, D)

    # shrink the tile for tiny inputs; pad the token axis to a tile multiple
    # (production N = b*500 is not a multiple of 256)
    tn = max(8, min(tn, pl.cdiv(N, 8) * 8))
    n_pad = pl.cdiv(N, tn) * tn
    if n_pad != N:
        q = jnp.pad(q, ((0, n_pad - N), (0, 0)))
        mem = jnp.pad(mem, ((0, 0), (0, n_pad - N), (0, 0)))
    mem_bf = mem.astype(bf16)

    weights = [wq, bq, wkv, bkv, wo, bo, n2w, n2b,
               w1, b1, w2, b2, n3w, n3b, hmask, hmaskT]

    def const_spec(arr):
        nd = arr.ndim
        return pl.BlockSpec(arr.shape, lambda i, _nd=nd: (0,) * _nd)

    out = pl.pallas_call(
        decoder_kernel,
        out_shape=jax.ShapeDtypeStruct((n_pad, D), jnp.float32),
        grid=(n_pad // tn,),
        in_specs=[pl.BlockSpec((tn, D), lambda i: (i, 0)),
                  pl.BlockSpec((NKEY, tn, D), lambda i: (0, i, 0))]
                 + [const_spec(a) for a in weights],
        out_specs=pl.BlockSpec((tn, D), lambda i: (i, 0)),
        compiler_params=pltpu.CompilerParams(
            dimension_semantics=("parallel",)),
    )(q, mem_bf, *weights)
    return out[:N]


# ---------------------------------------------------------------------------
# Plain-JAX glue
# ---------------------------------------------------------------------------
def nchw_to_tokens(t):
    b, c, h, w = t.shape
    return jnp.transpose(t, (0, 2, 3, 1)).reshape(b, h * w, c)


def gather_feat(feat, ind):
    # feat (b, hw, c), ind (b, K) -> (b, K, c)
    idx = jnp.broadcast_to(ind[..., None], ind.shape + (feat.shape[-1],))
    return jnp.take_along_axis(feat, idx, axis=1)


def mot_decode(hm, wh, reg, K):
    # TODO(synk): mot_decode internals are external to the module; standard
    # CenterNet/FairMOT decode (3x3 max-pool NMS + top-K, single class) assumed.
    b, _, h, w = hm.shape
    hmax = lax.reduce_window(hm, -jnp.inf, lax.max, (1, 1, 3, 3), (1, 1, 1, 1), 'SAME')
    heat = jnp.where(hmax == hm, hm, 0.0)
    scores, inds = lax.top_k(heat.reshape(b, -1), K)            # (b, K)
    ys = (inds // w).astype(jnp.float32)
    xs = (inds % w).astype(jnp.float32)
    reg_g = gather_feat(nchw_to_tokens(reg), inds)
    xs = xs + reg_g[..., 0]
    ys = ys + reg_g[..., 1]
    wh_g = gather_feat(nchw_to_tokens(wh), inds)
    bboxes = jnp.stack([xs - wh_g[..., 0] / 2, ys - wh_g[..., 1] / 2,
                        xs + wh_g[..., 0] / 2, ys + wh_g[..., 1] / 2], axis=-1)
    dets = jnp.concatenate([bboxes, scores[..., None],
                            jnp.zeros_like(scores)[..., None]], axis=-1)
    return dets, inds


def sine_table(d):
    # PositionEmbeddingSine.forward: fixed 11-entry table over x_embed = 0..1
    x_embed = jnp.arange(11, dtype=jnp.float32) * 0.1
    dim_t = jnp.arange(d, dtype=jnp.float32)
    dim_t = 10000.0 ** (2.0 * (dim_t // 2) / d)
    pos = x_embed[:, None] / dim_t                              # (11, d)
    return jnp.stack([jnp.sin(pos[:, 0::2]), jnp.cos(pos[:, 1::2])],
                     axis=2).reshape(11, d)


def adaptive_pool3(x_map, boxes):
    # AdaptiveAvgPool2d(3) over per-detection (dynamic-size) boxes via an
    # integral image; exact w.r.t. PyTorch's floor/ceil bin boundaries.
    d, h, w = x_map.shape
    S = jnp.pad(jnp.cumsum(jnp.cumsum(x_map, axis=1), axis=2),
                ((0, 0), (1, 0), (1, 0)))                       # (d, h+1, w+1)
    p = jnp.arange(3)

    def one(box):
        # TODO(synk): reference clamps to its fixed 272x152 map; use w-1/h-1 here.
        x1 = jnp.clip(box[0], 0, w - 1)
        y1 = jnp.clip(box[1], 0, h - 1)
        x2 = jnp.clip(box[2], 0, w - 1)
        y2 = jnp.clip(box[3], 0, h - 1)
        tw = x2 - x1
        th = y2 - y1
        valid = (tw > 0) & (th > 0)
        rs = jnp.clip(y1 + (p * th) // 3, 0, h)
        re = jnp.clip(y1 + ((p + 1) * th + 2) // 3, 0, h)
        cs = jnp.clip(x1 + (p * tw) // 3, 0, w)
        ce = jnp.clip(x1 + ((p + 1) * tw + 2) // 3, 0, w)

        def corner(R, C):
            return S[:, R[:, None], C[None, :]]                 # (d, 3, 3)

        area = jnp.maximum((re - rs)[:, None] * (ce - cs)[None, :], 1
                           ).astype(jnp.float32)
        pooled = (corner(re, ce) - corner(rs, ce)
                  - corner(re, cs) + corner(rs, cs)) / area
        return pooled.reshape(d, 9), valid

    return jax.vmap(one)(boxes)                                 # (K,d,9), (K,)


def embed_refine_vishm_forward(params, x, hm, wh, reg, vis_map, K):
    b, d, h, w = x.shape
    hw = h * w

    dets, inds = mot_decode(hm, wh, reg, K)
    inds_copy = inds

    # 3x3 neighbourhood indices.  TODO(synk): reference clamps to its fixed
    # 272*152 map size (neighbours can wrap across rows); clamp to hw-1 here.
    offs = jnp.array([-w - 1, -w, -w + 1, -1, 0, 1, w - 1, w, w + 1],
                     dtype=inds.dtype)
    inds9 = jnp.clip(inds[:, :, None] + offs[None, None, :], 0, hw - 1)

    x_tok = nchw_to_tokens(x)                                   # (b, hw, d)

    # TODO(synk): _tranpose_and_gather_feat_avgregion internals are not in the
    # spec; assumed to gather the 9 neighbourhood features as (b, K, d, 9).
    k_g = gather_feat(x_tok, inds9.reshape(b, K * NKEY)).reshape(b, K, NKEY, d)
    k_gathered = jnp.transpose(k_g, (0, 1, 3, 2))               # (b, K, d, 9)

    # per-detection AdaptiveAvgPool2d(3) of the clamped box region of x
    boxes = dets[:, :, :4].astype(jnp.int32)                    # .int() trunc
    pooled, valid = jax.vmap(adaptive_pool3)(x, boxes)          # (b,K,d,9),(b,K)
    k_patch = jnp.where(valid[..., None, None], pooled, k_gathered)
    memory = jnp.transpose(k_patch.reshape(b * K, d, NKEY), (2, 0, 1))  # (9,N,d)

    # visibility-indexed sine positional embedding added to the query tokens
    table = sine_table(d)                                       # (11, d)
    vis_g = gather_feat(nchw_to_tokens(vis_map), inds_copy)     # (b, K, 1)
    vis_idx = jnp.clip((vis_g[..., 0] * 10.0).astype(jnp.int32), 0, 10)
    vis_pos = table[vis_idx.reshape(b * K)]                     # (N, d)

    q_patch = gather_feat(x_tok, inds_copy).reshape(b * K, d) + vis_pos

    out = run_decoder(q_patch, memory, params).reshape(b, K, d)

    # scatter refined tokens back into the dense feature map
    x_new = jax.vmap(lambda xt, idx, o: xt.at[idx].set(o))(x_tok, inds_copy, out)
    return jnp.transpose(x_new.reshape(b, h, w, d), (0, 3, 1, 2))


def init_params(key):
    ks = jax.random.split(key, 8)
    s = 0.05
    return dict(
        in_proj_w=jax.random.normal(ks[0], (3 * D_MODEL, D_MODEL), jnp.float32) * s,
        in_proj_b=jax.random.normal(ks[1], (3 * D_MODEL,), jnp.float32) * s,
        out_proj_w=jax.random.normal(ks[2], (D_MODEL, D_MODEL), jnp.float32) * s,
        out_proj_b=jax.random.normal(ks[3], (D_MODEL,), jnp.float32) * s,
        lin1_w=jax.random.normal(ks[4], (FFN, D_MODEL), jnp.float32) * s,
        lin1_b=jax.random.normal(ks[5], (FFN,), jnp.float32) * s,
        lin2_w=jax.random.normal(ks[6], (D_MODEL, FFN), jnp.float32) * s,
        lin2_b=jax.random.normal(ks[7], (D_MODEL,), jnp.float32) * s,
        norm2_w=jnp.ones((D_MODEL,), jnp.float32),
        norm2_b=jnp.zeros((D_MODEL,), jnp.float32),
        norm3_w=jnp.ones((D_MODEL,), jnp.float32),
        norm3_b=jnp.zeros((D_MODEL,), jnp.float32),
    )


if __name__ == "__main__":
    key = jax.random.PRNGKey(0)
    kpar, kx, khm, kwh, kreg, kvis = jax.random.split(key, 6)

    # small shapes consistent with the module (original: 272x152 map, K=500)
    b, d, h, w, K = 2, D_MODEL, 16, 16, 8
    params = init_params(kpar)
    x = jax.random.normal(kx, (b, d, h, w), jnp.float32)
    hm = jax.nn.sigmoid(jax.random.normal(khm, (b, 1, h, w), jnp.float32))
    wh = jnp.abs(jax.random.normal(kwh, (b, 2, h, w), jnp.float32)) * 3.0
    reg = jax.random.normal(kreg, (b, 2, h, w), jnp.float32) * 0.1
    vis = jax.nn.sigmoid(jax.random.normal(kvis, (b, 1, h, w), jnp.float32))

    fwd = jax.jit(embed_refine_vishm_forward, static_argnames=("K",))
    x_out = fwd(params, x, hm, wh, reg, vis, K=K)
    jax.block_until_ready(x_out)

    assert x_out.shape == (b, d, h, w)
    assert bool(jnp.all(jnp.isfinite(x_out)))
    print("KERNEL_OK")
</pallas_src>

<mosaic_0001>
module attributes {stable_mosaic.version = 11 : i64} {
  func.func @decoder_kernel(%arg0: i32, %arg1: memref<16x128xf32, #tpu.memory_space<vmem>>, %arg2: memref<9x16x128xbf16, #tpu.memory_space<vmem>>, %arg3: memref<128x128xbf16, #tpu.memory_space<vmem>>, %arg4: memref<1x128xf32, #tpu.memory_space<vmem>>, %arg5: memref<128x256xbf16, #tpu.memory_space<vmem>>, %arg6: memref<1x256xf32, #tpu.memory_space<vmem>>, %arg7: memref<128x128xbf16, #tpu.memory_space<vmem>>, %arg8: memref<1x128xf32, #tpu.memory_space<vmem>>, %arg9: memref<1x128xf32, #tpu.memory_space<vmem>>, %arg10: memref<1x128xf32, #tpu.memory_space<vmem>>, %arg11: memref<128x512xbf16, #tpu.memory_space<vmem>>, %arg12: memref<1x512xf32, #tpu.memory_space<vmem>>, %arg13: memref<512x128xbf16, #tpu.memory_space<vmem>>, %arg14: memref<1x128xf32, #tpu.memory_space<vmem>>, %arg15: memref<1x128xf32, #tpu.memory_space<vmem>>, %arg16: memref<1x128xf32, #tpu.memory_space<vmem>>, %arg17: memref<128x8xf32, #tpu.memory_space<vmem>>, %arg18: memref<8x128xf32, #tpu.memory_space<vmem>>, %arg19: memref<16x128xf32, #tpu.memory_space<vmem>>) attributes {dimension_semantics = [#tpu.dimension_semantics<parallel>], iteration_bounds = array<i64: 1>, scalar_prefetch = 0 : i64, scratch_operands = 0 : i64, tpu.core_type = #tpu.core_type<tc>, window_params = [{transform_indices = @transform_0, window_bounds = array<i64: 16, 128>}, {transform_indices = @transform_1, window_bounds = array<i64: 9, 16, 128>}, {pipeline_mode = #tpu.pipeline_mode<synchronous>, transform_indices = @transform_2, window_bounds = array<i64: 128, 128>}, {pipeline_mode = #tpu.pipeline_mode<synchronous>, transform_indices = @transform_3, window_bounds = array<i64: 1, 128>}, {pipeline_mode = #tpu.pipeline_mode<synchronous>, transform_indices = @transform_4, window_bounds = array<i64: 128, 256>}, {pipeline_mode = #tpu.pipeline_mode<synchronous>, transform_indices = @transform_5, window_bounds = array<i64: 1, 256>}, {pipeline_mode = #tpu.pipeline_mode<synchronous>, transform_indices = @transform_6, window_bounds = array<i64: 128, 128>}, {pipeline_mode = #tpu.pipeline_mode<synchronous>, transform_indices = @transform_7, window_bounds = array<i64: 1, 128>}, {pipeline_mode = #tpu.pipeline_mode<synchronous>, transform_indices = @transform_8, window_bounds = array<i64: 1, 128>}, {pipeline_mode = #tpu.pipeline_mode<synchronous>, transform_indices = @transform_9, window_bounds = array<i64: 1, 128>}, {pipeline_mode = #tpu.pipeline_mode<synchronous>, transform_indices = @transform_10, window_bounds = array<i64: 128, 512>}, {pipeline_mode = #tpu.pipeline_mode<synchronous>, transform_indices = @transform_11, window_bounds = array<i64: 1, 512>}, {pipeline_mode = #tpu.pipeline_mode<synchronous>, transform_indices = @transform_12, window_bounds = array<i64: 512, 128>}, {pipeline_mode = #tpu.pipeline_mode<synchronous>, transform_indices = @transform_13, window_bounds = array<i64: 1, 128>}, {pipeline_mode = #tpu.pipeline_mode<synchronous>, transform_indices = @transform_14, window_bounds = array<i64: 1, 128>}, {pipeline_mode = #tpu.pipeline_mode<synchronous>, transform_indices = @transform_15, window_bounds = array<i64: 1, 128>}, {pipeline_mode = #tpu.pipeline_mode<synchronous>, transform_indices = @transform_16, window_bounds = array<i64: 128, 8>}, {pipeline_mode = #tpu.pipeline_mode<synchronous>, transform_indices = @transform_17, window_bounds = array<i64: 8, 128>}, {transform_indices = @transform_18, window_bounds = array<i64: 16, 128>}]} {
    %c0 = arith.constant 0 : index
    %c0_0 = arith.constant 0 : index
    %0 = vector.load %arg1[%c0, %c0_0] : memref<16x128xf32, #tpu.memory_space<vmem>>, vector<16x128xf32>
    %1 = arith.truncf %0 : vector<16x128xf32> to vector<16x128xbf16>
    %c0_1 = arith.constant 0 : index
    %c0_2 = arith.constant 0 : index
    %c0_3 = arith.constant 0 : index
    %2 = vector.load %arg2[%c0_1, %c0_2, %c0_3] : memref<9x16x128xbf16, #tpu.memory_space<vmem>>, vector<9x16x128xbf16>
    %3 = vector.shape_cast %2 : vector<9x16x128xbf16> to vector<144x128xbf16>
    %c0_4 = arith.constant 0 : index
    %c0_5 = arith.constant 0 : index
    %4 = vector.load %arg3[%c0_4, %c0_5] : memref<128x128xbf16, #tpu.memory_space<vmem>>, vector<128x128xbf16>
    %cst = arith.constant dense<0.000000e+00> : vector<16x128xf32>
    %5 = tpu.matmul %1, %4, %cst {dimension_numbers = #tpu.dot_dimension_numbers<[1], [0], [0], [1], [0, 0, 1, 1], [], []>} : vector<16x128xbf16>, vector<128x128xbf16>, vector<16x128xf32> -> vector<16x128xf32>
    %c0_6 = arith.constant 0 : index
    %c0_7 = arith.constant 0 : index
    %6 = vector.load %arg4[%c0_6, %c0_7] : memref<1x128xf32, #tpu.memory_space<vmem>>, vector<1x128xf32>
    %7 = vector.broadcast %6 : vector<1x128xf32> to vector<16x128xf32>
    %8 = arith.addf %5, %7 : vector<16x128xf32>
    %c0_8 = arith.constant 0 : index
    %c0_9 = arith.constant 0 : index
    %9 = vector.load %arg5[%c0_8, %c0_9] : memref<128x256xbf16, #tpu.memory_space<vmem>>, vector<128x256xbf16>
    %cst_10 = arith.constant dense<0.000000e+00> : vector<144x256xf32>
    %10 = tpu.matmul %3, %9, %cst_10 {dimension_numbers = #tpu.dot_dimension_numbers<[1], [0], [0], [1], [0, 0, 1, 1], [], []>} : vector<144x128xbf16>, vector<128x256xbf16>, vector<144x256xf32> -> vector<144x256xf32>
    %c0_11 = arith.constant 0 : index
    %c0_12 = arith.constant 0 : index
    %11 = vector.load %arg6[%c0_11, %c0_12] : memref<1x256xf32, #tpu.memory_space<vmem>>, vector<1x256xf32>
    %12 = vector.broadcast %11 : vector<1x256xf32> to vector<144x256xf32>
    %13 = arith.addf %10, %12 : vector<144x256xf32>
    %14 = vector.extract_strided_slice %13 {offsets = [0, 0], sizes = [144, 128], strides = [1, 1]} : vector<144x256xf32> to vector<144x128xf32>
    %15 = vector.extract_strided_slice %13 {offsets = [0, 128], sizes = [144, 128], strides = [1, 1]} : vector<144x256xf32> to vector<144x128xf32>
    %16 = vector.shape_cast %14 : vector<144x128xf32> to vector<9x16x128xf32>
    %17 = vector.shape_cast %8 : vector<16x128xf32> to vector<1x16x128xf32>
    %18 = vector.broadcast %17 : vector<1x16x128xf32> to vector<9x16x128xf32>
    %19 = arith.mulf %16, %18 : vector<9x16x128xf32>
    %20 = vector.shape_cast %19 : vector<9x16x128xf32> to vector<144x128xf32>
    %c0_13 = arith.constant 0 : index
    %c0_14 = arith.constant 0 : index
    %21 = vector.load %arg17[%c0_13, %c0_14] : memref<128x8xf32, #tpu.memory_space<vmem>>, vector<128x8xf32>
    %cst_15 = arith.constant dense<0.000000e+00> : vector<144x8xf32>
    %22 = tpu.matmul %20, %21, %cst_15 {dimension_numbers = #tpu.dot_dimension_numbers<[1], [0], [0], [1], [0, 0, 1, 1], [], []>} : vector<144x128xf32>, vector<128x8xf32>, vector<144x8xf32> -> vector<144x8xf32>
    %23 = vector.shape_cast %22 : vector<144x8xf32> to vector<9x16x8xf32>
    %cst_16 = arith.constant dense<0xFF800000> : vector<16x8xf32>
    %24 = vector.multi_reduction <maximumf>, %23, %cst_16 [0] : vector<9x16x8xf32> to vector<16x8xf32>
    %25 = vector.shape_cast %24 : vector<16x8xf32> to vector<1x16x8xf32>
    %26 = vector.broadcast %25 : vector<1x16x8xf32> to vector<9x16x8xf32>
    %27 = arith.subf %23, %26 : vector<9x16x8xf32>
    %28 = math.exp %27 : vector<9x16x8xf32>
    %cst_17 = arith.constant dense<0.000000e+00> : vector<16x8xf32>
    %29 = vector.multi_reduction <add>, %28, %cst_17 [0] : vector<9x16x8xf32> to vector<16x8xf32>
    %30 = tpu.reciprocal %29 {approx = true} : vector<16x8xf32> -> vector<16x8xf32>
    %31 = vector.shape_cast %30 : vector<16x8xf32> to vector<1x16x8xf32>
    %32 = vector.broadcast %31 : vector<1x16x8xf32> to vector<9x16x8xf32>
    %33 = arith.mulf %28, %32 : vector<9x16x8xf32>
    %34 = vector.shape_cast %33 : vector<9x16x8xf32> to vector<144x8xf32>
    %c0_18 = arith.constant 0 : index
    %c0_19 = arith.constant 0 : index
    %35 = vector.load %arg18[%c0_18, %c0_19] : memref<8x128xf32, #tpu.memory_space<vmem>>, vector<8x128xf32>
    %cst_20 = arith.constant dense<0.000000e+00> : vector<144x128xf32>
    %36 = tpu.matmul %34, %35, %cst_20 {dimension_numbers = #tpu.dot_dimension_numbers<[1], [0], [0], [1], [0, 0, 1, 1], [], []>} : vector<144x8xf32>, vector<8x128xf32>, vector<144x128xf32> -> vector<144x128xf32>
    %37 = arith.mulf %36, %15 : vector<144x128xf32>
    %38 = vector.shape_cast %37 : vector<144x128xf32> to vector<9x16x128xf32>
    %cst_21 = arith.constant dense<0.000000e+00> : vector<16x128xf32>
    %39 = vector.multi_reduction <add>, %38, %cst_21 [0] : vector<9x16x128xf32> to vector<16x128xf32>
    %40 = arith.truncf %39 : vector<16x128xf32> to vector<16x128xbf16>
    %c0_22 = arith.constant 0 : index
    %c0_23 = arith.constant 0 : index
    %41 = vector.load %arg7[%c0_22, %c0_23] : memref<128x128xbf16, #tpu.memory_space<vmem>>, vector<128x128xbf16>
    %cst_24 = arith.constant dense<0.000000e+00> : vector<16x128xf32>
    %42 = tpu.matmul %40, %41, %cst_24 {dimension_numbers = #tpu.dot_dimension_numbers<[1], [0], [0], [1], [0, 0, 1, 1], [], []>} : vector<16x128xbf16>, vector<128x128xbf16>, vector<16x128xf32> -> vector<16x128xf32>
    %c0_25 = arith.constant 0 : index
    %c0_26 = arith.constant 0 : index
    %43 = vector.load %arg8[%c0_25, %c0_26] : memref<1x128xf32, #tpu.memory_space<vmem>>, vector<1x128xf32>
    %44 = vector.broadcast %43 : vector<1x128xf32> to vector<16x128xf32>
    %45 = arith.addf %42, %44 : vector<16x128xf32>
    %46 = arith.addf %0, %45 : vector<16x128xf32>
    %cst_27 = arith.constant dense<0.000000e+00> : vector<16xf32>
    %47 = vector.multi_reduction <add>, %46, %cst_27 [1] : vector<16x128xf32> to vector<16xf32>
    %48 = vector.shape_cast %47 : vector<16xf32> to vector<16x1xf32>
    %cst_28 = arith.constant 1.280000e+02 : f32
    %49 = vector.broadcast %cst_28 : f32 to vector<16x1xf32>
    %50 = arith.divf %48, %49 : vector<16x1xf32>
    %51 = vector.broadcast %50 : vector<16x1xf32> to vector<16x128xf32>
    %52 = arith.subf %46, %51 : vector<16x128xf32>
    %53 = arith.mulf %52, %52 : vector<16x128xf32>
    %cst_29 = arith.constant dense<0.000000e+00> : vector<16xf32>
    %54 = vector.multi_reduction <add>, %53, %cst_29 [1] : vector<16x128xf32> to vector<16xf32>
    %55 = vector.shape_cast %54 : vector<16xf32> to vector<16x1xf32>
    %cst_30 = arith.constant 1.280000e+02 : f32
    %56 = vector.broadcast %cst_30 : f32 to vector<16x1xf32>
    %57 = arith.divf %55, %56 : vector<16x1xf32>
    %58 = vector.broadcast %50 : vector<16x1xf32> to vector<16x128xf32>
    %59 = arith.subf %46, %58 : vector<16x128xf32>
    %cst_31 = arith.constant 9.99999974E-6 : f32
    %60 = vector.broadcast %cst_31 : f32 to vector<16x1xf32>
    %61 = arith.addf %57, %60 : vector<16x1xf32>
    %62 = math.rsqrt %61 : vector<16x1xf32>
    %63 = vector.broadcast %62 : vector<16x1xf32> to vector<16x128xf32>
    %64 = arith.mulf %59, %63 : vector<16x128xf32>
    %c0_32 = arith.constant 0 : index
    %c0_33 = arith.constant 0 : index
    %65 = vector.load %arg9[%c0_32, %c0_33] : memref<1x128xf32, #tpu.memory_space<vmem>>, vector<1x128xf32>
    %66 = vector.broadcast %65 : vector<1x128xf32> to vector<16x128xf32>
    %67 = arith.mulf %64, %66 : vector<16x128xf32>
    %c0_34 = arith.constant 0 : index
    %c0_35 = arith.constant 0 : index
    %68 = vector.load %arg10[%c0_34, %c0_35] : memref<1x128xf32, #tpu.memory_space<vmem>>, vector<1x128xf32>
    %69 = vector.broadcast %68 : vector<1x128xf32> to vector<16x128xf32>
    %70 = arith.addf %67, %69 : vector<16x128xf32>
    %71 = arith.truncf %70 : vector<16x128xf32> to vector<16x128xbf16>
    %c0_36 = arith.constant 0 : index
    %c0_37 = arith.constant 0 : index
    %72 = vector.load %arg11[%c0_36, %c0_37] : memref<128x512xbf16, #tpu.memory_space<vmem>>, vector<128x512xbf16>
    %cst_38 = arith.constant dense<0.000000e+00> : vector<16x512xf32>
    %73 = tpu.matmul %71, %72, %cst_38 {dimension_numbers = #tpu.dot_dimension_numbers<[1], [0], [0], [1], [0, 0, 1, 1], [], []>} : vector<16x128xbf16>, vector<128x512xbf16>, vector<16x512xf32> -> vector<16x512xf32>
    %c0_39 = arith.constant 0 : index
    %c0_40 = arith.constant 0 : index
    %74 = vector.load %arg12[%c0_39, %c0_40] : memref<1x512xf32, #tpu.memory_space<vmem>>, vector<1x512xf32>
    %75 = vector.broadcast %74 : vector<1x512xf32> to vector<16x512xf32>
    %76 = arith.addf %73, %75 : vector<16x512xf32>
    %cst_41 = arith.constant 0.000000e+00 : f32
    %77 = vector.broadcast %cst_41 : f32 to vector<16x512xf32>
    %78 = arith.maximumf %76, %77 : vector<16x512xf32>
    %79 = arith.truncf %78 : vector<16x512xf32> to vector<16x512xbf16>
    %c0_42 = arith.constant 0 : index
    %c0_43 = arith.constant 0 : index
    %80 = vector.load %arg13[%c0_42, %c0_43] : memref<512x128xbf16, #tpu.memory_space<vmem>>, vector<512x128xbf16>
    %cst_44 = arith.constant dense<0.000000e+00> : vector<16x128xf32>
    %81 = tpu.matmul %79, %80, %cst_44 {dimension_numbers = #tpu.dot_dimension_numbers<[1], [0], [0], [1], [0, 0, 1, 1], [], []>} : vector<16x512xbf16>, vector<512x128xbf16>, vector<16x128xf32> -> vector<16x128xf32>
    %c0_45 = arith.constant 0 : index
    %c0_46 = arith.constant 0 : index
    %82 = vector.load %arg14[%c0_45, %c0_46] : memref<1x128xf32, #tpu.memory_space<vmem>>, vector<1x128xf32>
    %83 = vector.broadcast %82 : vector<1x128xf32> to vector<16x128xf32>
    %84 = arith.addf %81, %83 : vector<16x128xf32>
    %85 = arith.addf %70, %84 : vector<16x128xf32>
    %cst_47 = arith.constant dense<0.000000e+00> : vector<16xf32>
    %86 = vector.multi_reduction <add>, %85, %cst_47 [1] : vector<16x128xf32> to vector<16xf32>
    %87 = vector.shape_cast %86 : vector<16xf32> to vector<16x1xf32>
    %cst_48 = arith.constant 1.280000e+02 : f32
    %88 = vector.broadcast %cst_48 : f32 to vector<16x1xf32>
    %89 = arith.divf %87, %88 : vector<16x1xf32>
    %90 = vector.broadcast %89 : vector<16x1xf32> to vector<16x128xf32>
    %91 = arith.subf %85, %90 : vector<16x128xf32>
    %92 = arith.mulf %91, %91 : vector<16x128xf32>
    %cst_49 = arith.constant dense<0.000000e+00> : vector<16xf32>
    %93 = vector.multi_reduction <add>, %92, %cst_49 [1] : vector<16x128xf32> to vector<16xf32>
    %94 = vector.shape_cast %93 : vector<16xf32> to vector<16x1xf32>
    %cst_50 = arith.constant 1.280000e+02 : f32
    %95 = vector.broadcast %cst_50 : f32 to vector<16x1xf32>
    %96 = arith.divf %94, %95 : vector<16x1xf32>
    %97 = vector.broadcast %89 : vector<16x1xf32> to vector<16x128xf32>
    %98 = arith.subf %85, %97 : vector<16x128xf32>
    %cst_51 = arith.constant 9.99999974E-6 : f32
    %99 = vector.broadcast %cst_51 : f32 to vector<16x1xf32>
    %100 = arith.addf %96, %99 : vector<16x1xf32>
    %101 = math.rsqrt %100 : vector<16x1xf32>
    %102 = vector.broadcast %101 : vector<16x1xf32> to vector<16x128xf32>
    %103 = arith.mulf %98, %102 : vector<16x128xf32>
    %c0_52 = arith.constant 0 : index
    %c0_53 = arith.constant 0 : index
    %104 = vector.load %arg15[%c0_52, %c0_53] : memref<1x128xf32, #tpu.memory_space<vmem>>, vector<1x128xf32>
    %105 = vector.broadcast %104 : vector<1x128xf32> to vector<16x128xf32>
    %106 = arith.mulf %103, %105 : vector<16x128xf32>
    %c0_54 = arith.constant 0 : index
    %c0_55 = arith.constant 0 : index
    %107 = vector.load %arg16[%c0_54, %c0_55] : memref<1x128xf32, #tpu.memory_space<vmem>>, vector<1x128xf32>
    %108 = vector.broadcast %107 : vector<1x128xf32> to vector<16x128xf32>
    %109 = arith.addf %106, %108 : vector<16x128xf32>
    %c0_56 = arith.constant 0 : index
    %c0_57 = arith.constant 0 : index
    %110 = vector.load %arg19[%c0_56, %c0_57] : memref<16x128xf32, #tpu.memory_space<vmem>>, vector<16x128xf32>
    tpu.vector_store %arg19[%c0_56, %c0_57], %109 {strides = array<i32>} : memref<16x128xf32, #tpu.memory_space<vmem>>, vector<16x128xf32>,
    return
  }
  func.func @transform_0(%arg0: i32) -> (i32, i32) {
    %c0_i32 = arith.constant 0 : i32
    %c0_i32_0 = arith.constant 0 : i32
    return %arg0, %c0_i32 : i32, i32
  }
  func.func @transform_1(%arg0: i32) -> (i32, i32, i32) {
    %c0_i32 = arith.constant 0 : i32
    %c0_i32_0 = arith.constant 0 : i32
    %c0_i32_1 = arith.constant 0 : i32
    return %c0_i32, %arg0, %c0_i32_0 : i32, i32, i32
  }
  func.func @transform_2(%arg0: i32) -> (i32, i32) {
    %c0_i32 = arith.constant 0 : i32
    %c0_i32_0 = arith.constant 0 : i32
    %c0_i32_1 = arith.constant 0 : i32
    return %c0_i32, %c0_i32_0 : i32, i32
  }
  func.func @transform_3(%arg0: i32) -> (i32, i32) {
    %c0_i32 = arith.constant 0 : i32
    %c0_i32_0 = arith.constant 0 : i32
    %c0_i32_1 = arith.constant 0 : i32
    return %c0_i32, %c0_i32_0 : i32, i32
  }
  func.func @transform_4(%arg0: i32) -> (i32, i32) {
    %c0_i32 = arith.constant 0 : i32
    %c0_i32_0 = arith.constant 0 : i32
    %c0_i32_1 = arith.constant 0 : i32
    return %c0_i32, %c0_i32_0 : i32, i32
  }
  func.func @transform_5(%arg0: i32) -> (i32, i32) {
    %c0_i32 = arith.constant 0 : i32
    %c0_i32_0 = arith.constant 0 : i32
    %c0_i32_1 = arith.constant 0 : i32
    return %c0_i32, %c0_i32_0 : i32, i32
  }
  func.func @transform_6(%arg0: i32) -> (i32, i32) {
    %c0_i32 = arith.constant 0 : i32
    %c0_i32_0 = arith.constant 0 : i32
    %c0_i32_1 = arith.constant 0 : i32
    return %c0_i32, %c0_i32_0 : i32, i32
  }
  func.func @transform_7(%arg0: i32) -> (i32, i32) {
    %c0_i32 = arith.constant 0 : i32
    %c0_i32_0 = arith.constant 0 : i32
    %c0_i32_1 = arith.constant 0 : i32
    return %c0_i32, %c0_i32_0 : i32, i32
  }
  func.func @transform_8(%arg0: i32) -> (i32, i32) {
    %c0_i32 = arith.constant 0 : i32
    %c0_i32_0 = arith.constant 0 : i32
    %c0_i32_1 = arith.constant 0 : i32
    return %c0_i32, %c0_i32_0 : i32, i32
  }
  func.func @transform_9(%arg0: i32) -> (i32, i32) {
    %c0_i32 = arith.constant 0 : i32
    %c0_i32_0 = arith.constant 0 : i32
    %c0_i32_1 = arith.constant 0 : i32
    return %c0_i32, %c0_i32_0 : i32, i32
  }
  func.func @transform_10(%arg0: i32) -> (i32, i32) {
    %c0_i32 = arith.constant 0 : i32
    %c0_i32_0 = arith.constant 0 : i32
    %c0_i32_1 = arith.constant 0 : i32
    return %c0_i32, %c0_i32_0 : i32, i32
  }
  func.func @transform_11(%arg0: i32) -> (i32, i32) {
    %c0_i32 = arith.constant 0 : i32
    %c0_i32_0 = arith.constant 0 : i32
    %c0_i32_1 = arith.constant 0 : i32
    return %c0_i32, %c0_i32_0 : i32, i32
  }
  func.func @transform_12(%arg0: i32) -> (i32, i32) {
    %c0_i32 = arith.constant 0 : i32
    %c0_i32_0 = arith.constant 0 : i32
    %c0_i32_1 = arith.constant 0 : i32
    return %c0_i32, %c0_i32_0 : i32, i32
  }
  func.func @transform_13(%arg0: i32) -> (i32, i32) {
    %c0_i32 = arith.constant 0 : i32
    %c0_i32_0 = arith.constant 0 : i32
    %c0_i32_1 = arith.constant 0 : i32
    return %c0_i32, %c0_i32_0 : i32, i32
  }
  func.func @transform_14(%arg0: i32) -> (i32, i32) {
    %c0_i32 = arith.constant 0 : i32
    %c0_i32_0 = arith.constant 0 : i32
    %c0_i32_1 = arith.constant 0 : i32
    return %c0_i32, %c0_i32_0 : i32, i32
  }
  func.func @transform_15(%arg0: i32) -> (i32, i32) {
    %c0_i32 = arith.constant 0 : i32
    %c0_i32_0 = arith.constant 0 : i32
    %c0_i32_1 = arith.constant 0 : i32
    return %c0_i32, %c0_i32_0 : i32, i32
  }
  func.func @transform_16(%arg0: i32) -> (i32, i32) {
    %c0_i32 = arith.constant 0 : i32
    %c0_i32_0 = arith.constant 0 : i32
    %c0_i32_1 = arith.constant 0 : i32
    return %c0_i32, %c0_i32_0 : i32, i32
  }
  func.func @transform_17(%arg0: i32) -> (i32, i32) {
    %c0_i32 = arith.constant 0 : i32
    %c0_i32_0 = arith.constant 0 : i32
    %c0_i32_1 = arith.constant 0 : i32
    return %c0_i32, %c0_i32_0 : i32, i32
  }
  func.func @transform_18(%arg0: i32) -> (i32, i32) {
    %c0_i32 = arith.constant 0 : i32
    %c0_i32_0 = arith.constant 0 : i32
    return %arg0, %c0_i32 : i32, i32
  }
}

</mosaic_0001>

<bundles_post_ra>
// kernel: embed_refine_vishm_forward.1
= control target key start
LH: loop header
LB: loop body
LE: loop exit
PB: predicated region body
PF: predicated region fallthrough
CT: control target
= control target key end

     0   :  { %vm531_vm0 = vcmask 64512   ;;  %s3159_s2 = inlined_call_operand.vmem [shape: bf16[128,128], index: 2, kind: input, shape index: {}]   ;;  %s3160_s4 = inlined_call_operand.vmem [shape: bf16[128,256], index: 4, kind: input, shape index: {}]   ;;  %s3161_s3 = inlined_call_operand.vmem [shape: f32[1,128], index: 3, kind: input, shape index: {}]   ;;  %s3162_s0 = inlined_call_operand.vmem [shape: f32[16,128], index: 0, kind: input, shape index: {}]   ;;  %s3163_s1 = inlined_call_operand.vmem [shape: bf16[9,16,128], index: 1, kind: input, shape index: {}]   ;;  %s3164_s16 = inlined_call_operand.vmem [shape: f32[128,8], index: 16, kind: input, shape index: {}]   ;;  %s3165_s5 = inlined_call_operand.vmem [shape: f32[1,256], index: 5, kind: input, shape index: {}]   ;;  %s3166_s17 = inlined_call_operand.vmem [shape: f32[8,128], index: 17, kind: input, shape index: {}]   ;;  %s3167_s6 = inlined_call_operand.vmem [shape: bf16[128,128], index: 6, kind: input, shape index: {}]   ;;  %s3168_s7 = inlined_call_operand.vmem [shape: f32[1,128], index: 7, kind: input, shape index: {}]   ;;  %s3169_s10 = inlined_call_operand.vmem [shape: bf16[128,512], index: 10, kind: input, shape index: {}]   ;;  %s3170_s8 = inlined_call_operand.vmem [shape: f32[1,128], index: 8, kind: input, shape index: {}]   ;;  %s3171_s9 = inlined_call_operand.vmem [shape: f32[1,128], index: 9, kind: input, shape index: {}]   ;;  %s3172_s12 = inlined_call_operand.vmem [shape: bf16[512,128], index: 12, kind: input, shape index: {}]   ;;  %s3173_s11 = inlined_call_operand.vmem [shape: f32[1,512], index: 11, kind: input, shape index: {}]   ;;  %s3174_s13 = inlined_call_operand.vmem [shape: f32[1,128], index: 13, kind: input, shape index: {}]   ;;  %s3175_s14 = inlined_call_operand.vmem [shape: f32[1,128], index: 14, kind: input, shape index: {}]   ;;  %s3176_s15 = inlined_call_operand.vmem [shape: f32[1,128], index: 15, kind: input, shape index: {}]   ;;  %s3177_s18 = inlined_call_operand.vmem [shape: f32[16,128], index: 18, kind: output, shape index: {}]  }
   0x1   :  { %3180 = sst [smem:[#allocation2_spill]] %s3159_s2  ;;  %v2397_v31 = vld [vmem:[%s3162_s0] sm:$0xff]  ;;  %v2402_v32 = vld [vmem:[%s3162_s0 + $0x8] sm:$0xff]  ;;  %v2421_v37 = vld [vmem:[%s3163_s1 + $0x10] sm:$0xff] }
   0x2   :  { %3181 = sst [smem:[#allocation3_spill]] %s3160_s4  ;;  %v61_v34 = vpack.c.bf16 %v2402_v32, %v2397_v31  ;;  %v2409_v35 = vld [vmem:[%s3163_s1] sm:$0xff]  ;;  %v2415_v36 = vld [vmem:[%s3163_s1 + $0x8] sm:$0xff]  ;;  %v2427_v38 = vld [vmem:[%s3163_s1 + $0x18] sm:$0xff] }
   0x3   :  { %3182 = sst [smem:[#allocation4_spill]] %s3161_s3  ;;  %v2433_v39 = vld [vmem:[%s3163_s1 + $0x20] sm:$0xff]  ;;  %v459_v40 = vld [vmem:[%s3164_s16 + $0x78] sm:$0xff]  ;;  %v458_v41 = vld [vmem:[%s3164_s16 + $0x70] sm:$0xff] }
   0x4   :  { %3183 = sst [smem:[#allocation5_spill]] %s3171_s9  ;;  %460 = vmatpush.msra.mxu3 %v459_v40  ;;  %v457_v42 = vld [vmem:[%s3164_s16 + $0x68] sm:$0xff]  ;;  %v456_v43 = vld [vmem:[%s3164_s16 + $0x60] sm:$0xff]  ;;  %v455_v44 = vld [vmem:[%s3164_s16 + $0x58] sm:$0xff] }
   0x5   :  { %s3184_s29 = sld [smem:[#allocation2_spill]]  ;;  %v454_v45 = vld [vmem:[%s3164_s16 + $0x50] sm:$0xff]  ;;  %v453_v46 = vld [vmem:[%s3164_s16 + $0x48] sm:$0xff]  ;;  %v452_v48 = vld [vmem:[%s3164_s16 + $0x40] sm:$0xff] }
   0x6   :  { %s3185_s9 = sld [smem:[#allocation3_spill]]  ;;  %461 = vmatpush.msra.mxu3 %v458_v41  ;;  %v2460_v47 = vld [vmem:[%s3163_s1 + $0x28] sm:$0xff]  ;;  %v451_v49 = vld [vmem:[%s3164_s16 + $0x38] sm:$0xff]  ;;  %v450_v50 = vld [vmem:[%s3164_s16 + $0x30] sm:$0xff] }
   0x7   :  { %v449_v51 = vld [vmem:[%s3164_s16 + $0x28] sm:$0xff]  ;;  %v448_v52 = vld [vmem:[%s3164_s16 + $0x20] sm:$0xff]  ;;  %v447_v53 = vld [vmem:[%s3164_s16 + $0x18] sm:$0xff]  ;;  %s3186_s0 = sld [smem:[#allocation4_spill]] }
   0x8   :  { %462 = vmatpush.msra.mxu3 %v457_v42  ;;  %v2484_v54 = vld [vmem:[%s3163_s1 + $0x30] sm:$0xff]  ;;  %v445_v56 = vld [vmem:[%s3164_s16 + $0x8] sm:$0xff]  ;;  %v444_v57 = vld [vmem:[%s3164_s16] sm:$0xff]  ;;  %s3187_s21 = sld [smem:[#allocation5_spill]] }
   0x9   :  { %v446_v55 = vld [vmem:[%s3164_s16 + $0x10] sm:$0xff]  ;;  %v2499_v58 = vld [vmem:[%s3163_s1 + $0x38] sm:$0xff]  ;;  %v2505_v59 = vld [vmem:[%s3165_s5] sm:$0x3] }
   0xa   :  { %463 = vmatpush.msra.mxu3 %v456_v43  ;;  %v2511_v61 = vperm.slane %v2505_v59, 0  ;;  %v2516_v63 = vld [vmem:[%s3163_s1 + $0x40] sm:$0xff] }
   0xb   :  { %v2079_v0 = vld [vmem:[%s3184_s29 + $0x38] sm:$0xff]  ;;  %v2078_v6 = vld [vmem:[%s3184_s29 + $0x30] sm:$0xff]  ;;  %v2077_v10 = vld [vmem:[%s3184_s29 + $0x28] sm:$0xff] }
   0xc   :  { %v1751_v1 = vld [vmem:[%s3185_s9 + $0x70] sm:$0xf]  ;;  %v2095_v2 = vld [vmem:[%s3185_s9 + $0x74] sm:$0xf0]  ;;  %v1743_v4 = vld [vmem:[%s3185_s9 + $0x60] sm:$0xf]  ;;  %148 = vmatpush.bf16.msra.mxu0 %v2079_v0  ;;  %464 = vmatpush.msra.mxu3 %v455_v44 }
   0xd   :  { %v1752_v3 = vor.u32 %v2095_v2, %v1751_v1  ;;  %v2093_v5 = vld [vmem:[%s3185_s9 + $0x64] sm:$0xf0]  ;;  %v1735_v8 = vld [vmem:[%s3185_s9 + $0x50] sm:$0xf]  ;;  %v2091_v9 = vld [vmem:[%s3185_s9 + $0x54] sm:$0xf0] }
   0xe   :  { %v1744_v7 = vor.u32 %v2093_v5, %v1743_v4  ;;  %v1736_v11 = vor.u32 %v2091_v9, %v1735_v8  ;;  %v1727_v12 = vld [vmem:[%s3185_s9 + $0x40] sm:$0xf]  ;;  %v2089_v13 = vld [vmem:[%s3185_s9 + $0x44] sm:$0xf0]  ;;  %v1719_v16 = vld [vmem:[%s3185_s9 + $0x30] sm:$0xf]  ;;  %465 = vmatpush.msra.mxu3 %v454_v45 }
   0xf   :  { %318 = vmatpush.bf16.msra.mxu1 %v1752_v3  ;;  %v2076_v14 = vld [vmem:[%s3184_s29 + $0x20] sm:$0xff]  ;;  %v1728_v15 = vor.u32 %v2089_v13, %v1727_v12  ;;  %v2087_v17 = vld [vmem:[%s3185_s9 + $0x34] sm:$0xf0]  ;;  %v2085_v21 = vld [vmem:[%s3185_s9 + $0x24] sm:$0xf0] }
  0x10   :  { %149 = vmatpush.bf16.msra.mxu0 %v2078_v6  ;;  %v2075_v18 = vld [vmem:[%s3184_s29 + $0x18] sm:$0xff]  ;;  %v1720_v19 = vor.u32 %v2087_v17, %v1719_v16  ;;  %v1711_v20 = vld [vmem:[%s3185_s9 + $0x20] sm:$0xf]  ;;  %v2074_v22 = vld [vmem:[%s3184_s29 + $0x10] sm:$0xff]  ;;  %466 = vmatpush.msra.mxu3 %v453_v46 }
  0x11   :  { %v1712_v23 = vor.u32 %v2085_v21, %v1711_v20  ;;  %v1703_v24 = vld [vmem:[%s3185_s9 + $0x10] sm:$0xf]  ;;  %v2083_v25 = vld [vmem:[%s3185_s9 + $0x14] sm:$0xf0]  ;;  %v2073_v26 = vld [vmem:[%s3184_s29 + $0x8] sm:$0xff] }
  0x12   :  { %v1704_v27 = vor.u32 %v2083_v25, %v1703_v24  ;;  %v1695_v28 = vld [vmem:[%s3185_s9] sm:$0xf]  ;;  %v2081_v29 = vld [vmem:[%s3185_s9 + $0x4] sm:$0xf0]  ;;  %467 = vmatpush.msra.mxu3 %v452_v48 }
  0x13   :  { %319 = vmatpush.bf16.msra.mxu1 %v1744_v7  ;;  %v2072_v30 = vld [vmem:[%s3184_s29] sm:$0xff]  ;;  %v1696_v33 = vor.u32 %v2081_v29, %v1695_v28 }
  0x14   :  { %150 = vmatpush.bf16.msra.mxu0 %v2077_v10  ;;  %468 = vmatpush.msra.mxu3 %v451_v49  ;;  %v2169_v60 = vld [vmem:[%s3186_s0] ss:$0 sm:$0xff] }
  0x16   :  { %469 = vmatpush.msra.mxu3 %v450_v50 }
  0x17   :  { %320 = vmatpush.bf16.msra.mxu1 %v1736_v11 }
  0x18   :  { %151 = vmatpush.bf16.msra.mxu0 %v2076_v14  ;;  %470 = vmatpush.msra.mxu3 %v449_v51 }
  0x1a   :  { %471 = vmatpush.msra.mxu3 %v448_v52 }
  0x1b   :  { %321 = vmatpush.bf16.msra.mxu1 %v1728_v15 }
  0x1c   :  { %152 = vmatpush.bf16.msra.mxu0 %v2075_v18  ;;  %472 = vmatpush.msra.mxu3 %v447_v53 }
  0x1e   :  { %473 = vmatpush.msra.mxu3 %v446_v55 }
  0x1f   :  { %322 = vmatpush.bf16.msra.mxu1 %v1720_v19 }
  0x20   :  { %153 = vmatpush.bf16.msra.mxu0 %v2074_v22  ;;  %474 = vmatpush.msra.mxu3 %v445_v56 }
  0x22   :  { %475 = vmatpush.msra.mxu3 %v444_v57 }
  0x23   :  { %323 = vmatpush.bf16.msra.mxu1 %v1712_v23 }
  0x24   :  { %154 = vmatpush.bf16.msra.mxu0 %v2073_v26 }
  0x27   :  { %324 = vmatpush.bf16.msra.mxu1 %v1704_v27 }
  0x28   :  { %155 = vmatpush.bf16.msra.mxu0 %v2072_v30 }
  0x2b   :  { %325 = vmatpush.bf16.msra.mxu1 %v1696_v33  ;;  %156 = vmatmul.bf16.vlgmr.msra.gmra.mxu0 %v61_v34 }
  0x2e   :  { %326 = vmatmul.bf16.vlgmr.msra.gmra.mxu1 %v2409_v35 }
  0x3e   :  { %331 = vmatmul.bf16.gmra.mxu1 %v2415_v36 }
  0x4e   :  { %336 = vmatmul.bf16.gmra.mxu1 %v2421_v37 }
  0x5e   :  { %341 = vmatmul.bf16.gmra.mxu1 %v2427_v38 }
  0x6e   :  { %346 = vmatmul.bf16.gmra.mxu1 %v2433_v39 }
  0x7e   :  { %351 = vmatmul.bf16.gmra.mxu1 %v2460_v47 }
  0x8e   :  { %356 = vmatmul.bf16.gmra.mxu1 %v2484_v54 }
  0x9e   :  { %361 = vmatmul.bf16.gmra.mxu1 %v2499_v58 }
  0xa8   :  { %v157_v62 = vpop.f32.mrf.mxu0 }
  0xa9   :  { %v2518_v0 = vadd.f32 %v2169_v60, %v157_v62 }
  0xab   :  { %v327_v1 = vpop.f32.mrf.mxu1 }
  0xac   :  { %v328_v2 = vadd.f32 %v327_v1, %v2511_v61 }
  0xae   :  { %366 = vmatmul.bf16.gmra.mxu1 %v2516_v63  ;;  %v426_v3 = vmul.f32 %v328_v2, %v2518_v0 }
  0xb0   :  { %476 = vmatmul.f32.vlgmr.msra.gmra.mxu3 %v426_v3  ;;  %v159_v4 = vpop.f32.mrf.mxu0 }
  0xb1   :  { %v2523_v5 = vadd.f32 %v2169_v60, %v159_v4 }
  0xb3   :  { %v329_v6 = vpop.f32.mrf.mxu1 }
  0xb4   :  { %v330_v7 = vadd.f32 %v329_v6, %v2511_v61 }
  0xb6   :  { %v427_v8 = vmul.f32 %v330_v7, %v2523_v5 }
  0xb8   :  { %479 = vmatmul.f32.gmra.mxu3 %v427_v8 }
  0xbb   :  { %v332_v9 = vpop.f32.mrf.mxu1 }
  0xbc   :  { %v333_v10 = vadd.f32 %v332_v9, %v2511_v61 }
  0xbe   :  { %v428_v11 = vmul.f32 %v333_v10, %v2518_v0 }
  0xc0   :  { %482 = vmatmul.f32.gmra.mxu3 %v428_v11 }
  0xc3   :  { %v334_v12 = vpop.f32.mrf.mxu1 }
  0xc4   :  { %v335_v13 = vadd.f32 %v334_v12, %v2511_v61 }
  0xc6   :  { %v429_v14 = vmul.f32 %v335_v13, %v2523_v5 }
  0xc8   :  { %485 = vmatmul.f32.gmra.mxu3 %v429_v14 }
  0xcb   :  { %v337_v15 = vpop.f32.mrf.mxu1 }
  0xcc   :  { %v338_v16 = vadd.f32 %v337_v15, %v2511_v61 }
  0xce   :  { %v430_v17 = vmul.f32 %v338_v16, %v2518_v0 }
  0xd0   :  { %488 = vmatmul.f32.gmra.mxu3 %v430_v17  ;;  %v2094_v17 = vld [vmem:[%s3185_s9 + $0x74] sm:$0xf] }
  0xd3   :  { %v339_v18 = vpop.f32.mrf.mxu1 }
  0xd4   :  { %v340_v19 = vadd.f32 %v339_v18, %v2511_v61  ;;  %v1753_v18 = vld [vmem:[%s3185_s9 + $0x78] sm:$0xf0] }
  0xd6   :  { %v431_v20 = vmul.f32 %v340_v19, %v2523_v5  ;;  %v1756_v19 = vor.u32 %v2094_v17, %v1753_v18  ;;  %v2080_v17 = vld [vmem:[%s3185_s9 + $0x4] sm:$0xf]  ;;  %v1697_v18 = vld [vmem:[%s3185_s9 + $0x8] sm:$0xf0] }
  0xd8   :  { %491 = vmatmul.f32.gmra.mxu3 %v431_v20  ;;  %v2092_v20 = vld [vmem:[%s3185_s9 + $0x64] sm:$0xf]  ;;  %372 = vmatpush.bf16.msra.mxu2 %v1756_v19 }
  0xdb   :  { %v342_v21 = vpop.f32.mrf.mxu1 }
  0xdc   :  { %v343_v22 = vadd.f32 %v342_v21, %v2511_v61  ;;  %v1745_v21 = vld [vmem:[%s3185_s9 + $0x68] sm:$0xf0] }
  0xde   :  { %v432_v23 = vmul.f32 %v343_v22, %v2518_v0  ;;  %v1748_v22 = vor.u32 %v2092_v20, %v1745_v21 }
  0xe0   :  { %494 = vmatmul.f32.gmra.mxu3 %v432_v23  ;;  %373 = vmatpush.bf16.msra.mxu2 %v1748_v22  ;;  %v1700_v22 = vor.u32 %v2080_v17, %v1697_v18 }
  0xe3   :  { %v344_v24 = vpop.f32.mrf.mxu1 }
  0xe4   :  { %v345_v25 = vadd.f32 %v344_v24, %v2511_v61 }
  0xe6   :  { %v433_v26 = vmul.f32 %v345_v25, %v2523_v5  ;;  %v2090_v25 = vld [vmem:[%s3185_s9 + $0x54] sm:$0xf] }
  0xe8   :  { %497 = vmatmul.f32.gmra.mxu3 %v433_v26  ;;  %v1737_v26 = vld [vmem:[%s3185_s9 + $0x58] sm:$0xf0] }
  0xeb   :  { %v347_v27 = vpop.f32.mrf.mxu1 }
  0xec   :  { %v348_v28 = vadd.f32 %v347_v27, %v2511_v61  ;;  %v1740_v27 = vor.u32 %v2090_v25, %v1737_v26 }
  0xee   :  { %v434_v29 = vmul.f32 %v348_v28, %v2518_v0  ;;  %374 = vmatpush.bf16.msra.mxu2 %v1740_v27  ;;  %v2088_v28 = vld [vmem:[%s3185_s9 + $0x44] sm:$0xf] }
  0xf0   :  { %500 = vmatmul.f32.gmra.mxu3 %v434_v29  ;;  %v1729_v29 = vld [vmem:[%s3185_s9 + $0x48] sm:$0xf0] }
  0xf3   :  { %v349_v30 = vpop.f32.mrf.mxu1 }
  0xf4   :  { %v350_v33 = vadd.f32 %v349_v30, %v2511_v61  ;;  %v1732_v30 = vor.u32 %v2088_v28, %v1729_v29 }
  0xf6   :  { %v435_v34 = vmul.f32 %v350_v33, %v2523_v5  ;;  %375 = vmatpush.bf16.msra.mxu2 %v1732_v30 }
  0xf8   :  { %503 = vmatmul.f32.gmra.mxu3 %v435_v34  ;;  %v2086_v34 = vld [vmem:[%s3185_s9 + $0x34] sm:$0xf] }
  0xfb   :  { %v352_v40 = vpop.f32.mrf.mxu1 }
  0xfc   :  { %v353_v41 = vadd.f32 %v352_v40, %v2511_v61  ;;  %v1721_v40 = vld [vmem:[%s3185_s9 + $0x38] sm:$0xf0] }
  0xfe   :  { %v436_v42 = vmul.f32 %v353_v41, %v2518_v0  ;;  %v1724_v41 = vor.u32 %v2086_v34, %v1721_v40 }
 0x100   :  { %506 = vmatmul.f32.gmra.mxu3 %v436_v42  ;;  %376 = vmatpush.bf16.msra.mxu2 %v1724_v41 }
 0x103   :  { %v354_v43 = vpop.f32.mrf.mxu1 }
 0x104   :  { %v355_v44 = vadd.f32 %v354_v43, %v2511_v61 }
 0x106   :  { %v437_v45 = vmul.f32 %v355_v44, %v2523_v5  ;;  %v2084_v44 = vld [vmem:[%s3185_s9 + $0x24] sm:$0xf] }
 0x108   :  { %509 = vmatmul.f32.gmra.mxu3 %v437_v45  ;;  %v1713_v45 = vld [vmem:[%s3185_s9 + $0x28] sm:$0xf0] }
 0x10b   :  { %v357_v46 = vpop.f32.mrf.mxu1 }
 0x10c   :  { %v358_v48 = vadd.f32 %v357_v46, %v2511_v61  ;;  %v1716_v46 = vor.u32 %v2084_v44, %v1713_v45 }
 0x10e   :  { %v438_v49 = vmul.f32 %v358_v48, %v2518_v0  ;;  %377 = vmatpush.bf16.msra.mxu2 %v1716_v46 }
 0x110   :  { %512 = vmatmul.f32.gmra.mxu3 %v438_v49 }
 0x113   :  { %v359_v50 = vpop.f32.mrf.mxu1 }
 0x114   :  { %v360_v51 = vadd.f32 %v359_v50, %v2511_v61 }
 0x116   :  { %v439_v52 = vmul.f32 %v360_v51, %v2523_v5 }
 0x118   :  { %515 = vmatmul.f32.gmra.mxu3 %v439_v52 }
 0x11b   :  { %v362_v53 = vpop.f32.mrf.mxu1 }
 0x11c   :  { %v363_v55 = vadd.f32 %v362_v53, %v2511_v61 }
 0x11e   :  { %v440_v56 = vmul.f32 %v363_v55, %v2518_v0 }
 0x120   :  { %518 = vmatmul.f32.gmra.mxu3 %v440_v56  ;;  %v2082_v56 = vld [vmem:[%s3185_s9 + $0x14] sm:$0xf] }
 0x123   :  { %v364_v57 = vpop.f32.mrf.mxu1 }
 0x124   :  { %v365_v60 = vadd.f32 %v364_v57, %v2511_v61  ;;  %v1705_v57 = vld [vmem:[%s3185_s9 + $0x18] sm:$0xf0] }
 0x126   :  { %v441_v62 = vmul.f32 %v365_v60, %v2523_v5 }
 0x128   :  { %521 = vmatmul.f32.gmra.mxu3 %v441_v62 }
 0x12b   :  { %v367_v1 = vpop.f32.mrf.mxu1 }
 0x12c   :  { %v368_v2 = vadd.f32 %v367_v1, %v2511_v61  ;;  %v1708_v1 = vor.u32 %v2082_v56, %v1705_v57 }
 0x12e   :  { %v442_v3 = vmul.f32 %v368_v2, %v2518_v0  ;;  %378 = vmatpush.bf16.msra.mxu2 %v1708_v1 }
 0x130   :  { %524 = vmatmul.f32.gmra.mxu3 %v442_v3 }
 0x132   :  { %379 = vmatpush.bf16.msra.mxu2 %v1700_v22 }
 0x133   :  { %v369_v4 = vpop.f32.mrf.mxu1  ;;  %v2557_v6 = vpop.f32.mrf.mxu3 }
 0x134   :  { %v370_v7 = vadd.f32 %v369_v4, %v2511_v61  ;;  %v532_v48 = vsel %vm531_vm0, %v2557_v6, -inf }
 0x135   :  { %380 = vmatmul.bf16.vlgmr.msra.gmra.mxu2 %v2409_v35 }
 0x136   :  { %v443_v8 = vmul.f32 %v370_v7, %v2523_v5 }
 0x138   :  { %527 = vmatmul.f32.gmra.mxu3 %v443_v8 }
 0x13b   :  { %v2561_v9 = vpop.f32.mrf.mxu3 }
 0x13c   :  { %v549_v25 = vsel %vm531_vm0, %v2561_v9, -inf }
 0x143   :  { %v2563_v10 = vpop.f32.mrf.mxu3 }
 0x144   :  { %v533_v51 = vsel %vm531_vm0, %v2563_v10, -inf }
 0x145   :  { %385 = vmatmul.bf16.gmra.mxu2 %v2415_v36 }
 0x14b   :  { %v2565_v11 = vpop.f32.mrf.mxu3 }
 0x14c   :  { %v550_v28 = vsel %vm531_vm0, %v2565_v11, -inf }
 0x153   :  { %v2567_v12 = vpop.f32.mrf.mxu3 }
 0x154   :  { %v534_v43 = vsel %vm531_vm0, %v2567_v12, -inf }
 0x155   :  { %v535_v52 = vmax.f32 %v532_v48, %v534_v43  ;;  %390 = vmatmul.bf16.gmra.mxu2 %v2421_v37 }
 0x15b   :  { %v2569_v13 = vpop.f32.mrf.mxu3 }
 0x15c   :  { %v551_v19 = vsel %vm531_vm0, %v2569_v13, -inf }
 0x15d   :  { %v552_v29 = vmax.f32 %v549_v25, %v551_v19 }
 0x163   :  { %v2571_v0 = vpop.f32.mrf.mxu3 }
 0x164   :  { %v536_v49 = vsel %vm531_vm0, %v2571_v0, -inf }
 0x165   :  { %v537_v60 = vmax.f32 %v533_v51, %v536_v49  ;;  %395 = vmatmul.bf16.gmra.mxu2 %v2427_v38 }
 0x16b   :  { %v2573_v14 = vpop.f32.mrf.mxu3 }
 0x16c   :  { %v553_v26 = vsel %vm531_vm0, %v2573_v14, -inf }
 0x16d   :  { %v554_v44 = vmax.f32 %v550_v28, %v553_v26 }
 0x173   :  { %v2575_v15 = vpop.f32.mrf.mxu3 }
 0x174   :  { %v538_v50 = vsel %vm531_vm0, %v2575_v15, -inf }
 0x175   :  { %v539_v62 = vmax.f32 %v535_v52, %v538_v50  ;;  %400 = vmatmul.bf16.gmra.mxu2 %v2433_v39  ;;  %v2103_v39 = vld [vmem:[%s3167_s6 + $0x38] sm:$0xff] }
 0x176   :  { %903 = vmatpush.bf16.msrb.mxu1 %v2103_v39 }
 0x17b   :  { %v2577_v61 = vpop.f32.mrf.mxu3 }
 0x17c   :  { %v555_v30 = vsel %vm531_vm0, %v2577_v61, -inf }
 0x17d   :  { %v556_v49 = vmax.f32 %v552_v29, %v555_v30 }
 0x183   :  { %v2579_v5 = vpop.f32.mrf.mxu3 }
 0x184   :  { %v540_v53 = vsel %vm531_vm0, %v2579_v5, -inf }
 0x185   :  { %v541_v3 = vmax.f32 %v537_v60, %v540_v53  ;;  %405 = vmatmul.bf16.gmra.mxu2 %v2460_v47 }
 0x18b   :  { %v2581_v16 = vpop.f32.mrf.mxu3 }
 0x18c   :  { %v557_v45 = vsel %vm531_vm0, %v2581_v16, -inf }
 0x18d   :  { %v558_v53 = vmax.f32 %v554_v44, %v557_v45 }
 0x193   :  { %v2595_v23 = vpop.f32.mrf.mxu3 }
 0x194   :  { %v542_v55 = vsel %vm531_vm0, %v2595_v23, -inf }
 0x195   :  { %v543_v4 = vmax.f32 %v539_v62, %v542_v55  ;;  %410 = vmatmul.bf16.gmra.mxu2 %v2484_v54 }
 0x19b   :  { %v2597_v24 = vpop.f32.mrf.mxu3 }
 0x19c   :  { %v559_v46 = vsel %vm531_vm0, %v2597_v24, -inf }
 0x19d   :  { %v560_v55 = vmax.f32 %v556_v49, %v559_v46 }
 0x1a3   :  { %v2611_v33 = vpop.f32.mrf.mxu3 }
 0x1a4   :  { %v544_v2 = vsel %vm531_vm0, %v2611_v33, -inf }
 0x1a5   :  { %v545_v20 = vmax.f32 %v541_v3, %v544_v2  ;;  %415 = vmatmul.bf16.gmra.mxu2 %v2499_v58 }
 0x1ab   :  { %v2619_v42 = vpop.f32.mrf.mxu3 }
 0x1b3   :  { %v525_v7 = vpop.f32.mrf.mxu3 }
 0x1b4   :  { %v546_v8 = vsel %vm531_vm0, %v525_v7, -inf }
 0x1b5   :  { %v547_v21 = vmax.f32 %v543_v4, %v546_v8  ;;  %420 = vmatmul.bf16.gmra.mxu2 %v2516_v63  ;;  %v2102_v63 = vld [vmem:[%s3167_s6 + $0x30] sm:$0xff] }
 0x1b6   :  { %904 = vmatpush.bf16.msrb.mxu1 %v2102_v63 }
 0x1b7   :  { %v548_v27 = vmax.f32 %v547_v21, %v545_v20 }
 0x1b8   :  { %v381_v47 = vpop.f32.mrf.mxu2 }
 0x1b9   :  { %v566_v34 = vsub.f32 %v2557_v6, %v548_v27  ;;  %v568_v40 = vsub.f32 %v2563_v10, %v548_v27  ;;  %v570_v41 = vsub.f32 %v2567_v12, %v548_v27  ;;  %v572_v43 = vsub.f32 %v2571_v0, %v548_v27 }
 0x1ba   :  { %v574_v48 = vsub.f32 %v2575_v15, %v548_v27  ;;  %v561_v12 = vsel %vm531_vm0, %v2619_v42, -inf  ;;  %v576_v0 = vsub.f32 %v2579_v5, %v548_v27  ;;  %v578_v56 = vsub.f32 %v2595_v23, %v548_v27  ;;  %v674_v23 = vld [vmem:[%s3166_s17] sm:$0xff] }
 0x1bb   :  { %v584_v50 = vmul.f32 1.442695, %v566_v34  ;;  %v588_v6 = vmul.f32 1.442695, %v568_v40  ;;  %v592_v51 = vmul.f32 1.442695, %v570_v41  ;;  %v2676_v10 = vpop.f32.mrf.mxu3  ;;  %v580_v15 = vsub.f32 %v2611_v33, %v548_v27  ;;  %744 = vmatpush.msrb.mxu0 %v674_v23 }
 0x1bc   :  { %v596_v52 = vmul.f32 1.442695, %v572_v43  ;;  %v600_v35 = vmul.f32 1.442695, %v574_v48  ;;  %v563_v57 = vsel %vm531_vm0, %v2676_v10, -inf  ;;  %v562_v60 = vmax.f32 %v558_v53, %v561_v12 }
 0x1bd   :  { %2176 = vpow2.f32 %v584_v50  ;;  %v582_v62 = vsub.f32 %v525_v7, %v548_v27  ;;  %v564_v1 = vmax.f32 %v560_v55, %v563_v57  ;;  %v604_v2 = vmul.f32 1.442695, %v576_v0 }
 0x1be   :  { %2178 = vpow2.f32 %v588_v6  ;;  %v608_v5 = vmul.f32 1.442695, %v578_v56  ;;  %v612_v4 = vmul.f32 1.442695, %v580_v15 }
 0x1bf   :  { %2180 = vpow2.f32 %v592_v51  ;;  %v565_v3 = vmax.f32 %v564_v1, %v562_v60  ;;  %v616_v8 = vmul.f32 1.442695, %v582_v62 }
 0x1c0   :  { %2182 = vpow2.f32 %v596_v52  ;;  %v383_v54 = vpop.f32.mrf.mxu2 }
 0x1c1   :  { %2184 = vpow2.f32 %v600_v35  ;;  %v567_v17 = vsub.f32 %v2561_v9, %v565_v3  ;;  %v569_v18 = vsub.f32 %v2565_v11, %v565_v3  ;;  %v571_v20 = vsub.f32 %v2569_v13, %v565_v3 }
 0x1c2   :  { %2186 = vpow2.f32 %v604_v2  ;;  %v573_v21 = vsub.f32 %v2573_v14, %v565_v3  ;;  %v575_v26 = vsub.f32 %v2577_v61, %v565_v3  ;;  %v577_v30 = vsub.f32 %v2581_v16, %v565_v3 }
 0x1c3   :  { %v2688_v33 = vpop.eup %2176  ;;  %2188 = vpow2.f32 %v608_v5  ;;  %v586_v28 = vmul.f32 1.442695, %v567_v17  ;;  %v590_v13 = vmul.f32 1.442695, %v569_v18  ;;  %v594_v34 = vmul.f32 1.442695, %v571_v20 }
 0x1c4   :  { %v2692_v7 = vpop.eup %2178  ;;  %v620_v19 = vsel %vm531_vm0, %v2688_v33, 0.0  ;;  %2190 = vpow2.f32 %v612_v4  ;;  %v598_v40 = vmul.f32 1.442695, %v573_v21  ;;  %v579_v61 = vsub.f32 %v2597_v24, %v565_v3 }
 0x1c5   :  { %v2698_v22 = vpop.eup %2180  ;;  %v621_v25 = vsel %vm531_vm0, %v2692_v7, 0.0  ;;  %2192 = vpow2.f32 %v616_v8  ;;  %v602_v45 = vmul.f32 1.442695, %v575_v26  ;;  %v581_v50 = vsub.f32 %v2619_v42, %v565_v3 }
 0x1c6   :  { %v2702_v9 = vpop.eup %2182  ;;  %v622_v11 = vadd.f32 %v621_v25, %v620_v19  ;;  %v623_v27 = vsel %vm531_vm0, %v2698_v22, 0.0  ;;  %2194 = vpow2.f32 %v586_v28  ;;  %v606_v6 = vmul.f32 1.442695, %v577_v30 }
 0x1c7   :  { %v2707_v29 = vpop.eup %2184  ;;  %v625_v41 = vsel %vm531_vm0, %v2702_v9, 0.0  ;;  %2196 = vpow2.f32 %v590_v13  ;;  %v583_v24 = vsub.f32 %v2676_v10, %v565_v3  ;;  %v610_v52 = vmul.f32 1.442695, %v579_v61 }
 0x1c8   :  { %v624_v14 = vadd.f32 %v623_v27, %v622_v11  ;;  %v2187_v43 = vpop.eup %2186  ;;  %v627_v48 = vsel %vm531_vm0, %v2707_v29, 0.0  ;;  %2198 = vpow2.f32 %v594_v34  ;;  %v614_v15 = vmul.f32 1.442695, %v581_v50  ;;  %v386_v58 = vpop.f32.mrf.mxu2 }
 0x1c9   :  { %v2189_v46 = vpop.eup %2188  ;;  %2200 = vpow2.f32 %v598_v40  ;;  %v629_v12 = vsel %vm531_vm0, %v2187_v43, 0.0  ;;  %v618_v60 = vmul.f32 1.442695, %v583_v24 }
 0x1ca   :  { %v626_v44 = vadd.f32 %v625_v41, %v624_v14  ;;  %v2191_v16 = vpop.eup %2190  ;;  %2202 = vpow2.f32 %v602_v45  ;;  %v631_v53 = vsel %vm531_vm0, %v2189_v46, 0.0 }
 0x1cb   :  { %v2193_v51 = vpop.eup %2192  ;;  %2204 = vpow2.f32 %v606_v6  ;;  %v633_v57 = vsel %vm531_vm0, %v2191_v16, 0.0 }
 0x1cc   :  { %v628_v49 = vadd.f32 %v627_v48, %v626_v44  ;;  %v2195_v36 = vpop.eup %2194  ;;  %2206 = vpow2.f32 %v610_v52  ;;  %v635_v5 = vsel %vm531_vm0, %v2193_v51, 0.0 }
 0x1cd   :  { %v2197_v55 = vpop.eup %2196  ;;  %v637_v35 = vsel %vm531_vm0, %v2195_v36, 0.0  ;;  %2208 = vpow2.f32 %v614_v15  ;;  %v2101_v15 = vld [vmem:[%s3167_s6 + $0x28] sm:$0xff] }
 0x1ce   :  { %v630_v0 = vadd.f32 %v629_v12, %v628_v49  ;;  %v2199_v42 = vpop.eup %2198  ;;  %v638_v62 = vsel %vm531_vm0, %v2197_v55, 0.0  ;;  %2210 = vpow2.f32 %v618_v60  ;;  %905 = vmatpush.bf16.msrb.mxu1 %v2101_v15 }
 0x1cf   :  { %v2201_v1 = vpop.eup %2200  ;;  %v639_v2 = vadd.f32 %v638_v62, %v637_v35  ;;  %v640_v3 = vsel %vm531_vm0, %v2199_v42, 0.0 }
 0x1d0   :  { %v632_v56 = vadd.f32 %v631_v53, %v630_v0  ;;  %v2203_v4 = vpop.eup %2202  ;;  %v642_v17 = vsel %vm531_vm0, %v2201_v1, 0.0 }
 0x1d1   :  { %v641_v8 = vadd.f32 %v640_v3, %v639_v2  ;;  %v2205_v18 = vpop.eup %2204  ;;  %v644_v20 = vsel %vm531_vm0, %v2203_v4, 0.0  ;;  %v2100_v2 = vld [vmem:[%s3167_s6 + $0x20] sm:$0xff] }
 0x1d2   :  { %v634_v10 = vadd.f32 %v633_v57, %v632_v56  ;;  %v2207_v21 = vpop.eup %2206  ;;  %v646_v11 = vsel %vm531_vm0, %v2205_v18, 0.0  ;;  %906 = vmatpush.bf16.msrb.mxu1 %v2100_v2 }
 0x1d3   :  { %v643_v19 = vadd.f32 %v642_v17, %v641_v8  ;;  %v2209_v26 = vpop.eup %2208  ;;  %v648_v13 = vsel %vm531_vm0, %v2207_v21, 0.0 }
 0x1d4   :  { %v636_v23 = vadd.f32 %v635_v5, %v634_v10  ;;  %v2211_v28 = vpop.eup %2210  ;;  %v650_v34 = vsel %vm531_vm0, %v2209_v26, 0.0 }
 0x1d5   :  { %v645_v25 = vadd.f32 %v644_v20, %v643_v19  ;;  %v652_v48 = vsel %vm531_vm0, %v2211_v28, 0.0 }
 0x1d6   :  { %2212 = vrcp.f32 %v636_v23 }
 0x1d7   :  { %v647_v27 = vadd.f32 %v646_v11, %v645_v25  ;;  %v2099_v25 = vld [vmem:[%s3167_s6 + $0x18] sm:$0xff] }
 0x1d8   :  { %907 = vmatpush.bf16.msrb.mxu1 %v2099_v25 }
 0x1d9   :  { %v649_v30 = vadd.f32 %v648_v13, %v647_v27 }
 0x1db   :  { %v651_v41 = vadd.f32 %v650_v34, %v649_v30 }
 0x1dc   :  { %v2213_v14 = vpop.eup %2212 }
 0x1dd   :  { %v656_v40 = vmul.f32 %v2213_v14, %v2688_v33  ;;  %v664_v44 = vmul.f32 %v2213_v14, %v2707_v29  ;;  %v666_v61 = vmul.f32 %v2213_v14, %v2187_v43  ;;  %v668_v45 = vmul.f32 %v2213_v14, %v2189_v46 }
 0x1de   :  { %v670_v49 = vmul.f32 %v2213_v14, %v2191_v16  ;;  %v672_v37 = vmul.f32 %v2213_v14, %v2193_v51  ;;  %v653_v50 = vadd.f32 %v652_v48, %v651_v41  ;;  %v658_v43 = vmul.f32 %v2213_v14, %v2692_v7 }
 0x1df   :  { %1757 = vmatmul.msk.f32.vlgmr.msrb.gmra.mxu0 %vm531_vm0, %v656_v40  ;;  %v660_v16 = vmul.f32 %v2213_v14, %v2698_v22  ;;  %v662_v51 = vmul.f32 %v2213_v14, %v2702_v9  ;;  %v2765_v7 = vperm.slane %v2505_v59, 1  ;;  %v388_v22 = vpop.f32.mrf.mxu2 }
 0x1e0   :  { %2214 = vrcp.f32 %v653_v50 }
 0x1e1   :  { %v382_v9 = vadd.f32 %v381_v47, %v2765_v7  ;;  %v384_v35 = vadd.f32 %v383_v54, %v2765_v7  ;;  %v387_v60 = vadd.f32 %v386_v58, %v2765_v7  ;;  %v389_v3 = vadd.f32 %v388_v22, %v2765_v7 }
 0x1e6   :  { %v2215_v6 = vpop.eup %2214 }
 0x1e7   :  { %v657_v12 = vmul.f32 %v2215_v6, %v2195_v36  ;;  %v663_v24 = vmul.f32 %v2215_v6, %v2201_v1  ;;  %v665_v0 = vmul.f32 %v2215_v6, %v2203_v4  ;;  %v667_v33 = vmul.f32 %v2215_v6, %v2205_v18  ;;  %v391_v56 = vpop.f32.mrf.mxu2 }
 0x1e8   :  { %v669_v52 = vmul.f32 %v2215_v6, %v2207_v21  ;;  %v671_v53 = vmul.f32 %v2215_v6, %v2209_v26  ;;  %v673_v29 = vmul.f32 %v2215_v6, %v2211_v28  ;;  %v659_v46 = vmul.f32 %v2215_v6, %v2197_v55 }
 0x1e9   :  { %1758 = vmatmul.msk.f32.gmra.mxu0 %vm531_vm0, %v657_v12  ;;  %v661_v38 = vmul.f32 %v2215_v6, %v2199_v42  ;;  %v392_v17 = vadd.f32 %v391_v56, %v2765_v7 }
 0x1ef   :  { %v393_v57 = vpop.f32.mrf.mxu2 }
 0x1f0   :  { %v394_v11 = vadd.f32 %v393_v57, %v2765_v7 }
 0x1f1   :  { %1759 = vmatmul.msk.f32.gmra.mxu0 %vm531_vm0, %v658_v43 }
 0x1f7   :  { %v396_v5 = vpop.f32.mrf.mxu2 }
 0x1f8   :  { %v397_v14 = vadd.f32 %v396_v5, %v2765_v7 }
 0x1f9   :  { %1760 = vmatmul.msk.f32.gmra.mxu0 %vm531_vm0, %v659_v46  ;;  %v2096_v46 = vld [vmem:[%s3167_s6] sm:$0xff] }
 0x1ff   :  { %v398_v19 = vpop.f32.mrf.mxu2 }
 0x201   :  { %1761 = vmatmul.msk.f32.gmra.mxu0 %vm531_vm0, %v660_v16 }
 0x207   :  { %v401_v28 = vpop.f32.mrf.mxu2 }
 0x209   :  { %1762 = vmatmul.msk.f32.gmra.mxu0 %vm531_vm0, %v661_v38 }
 0x20f   :  { %v403_v41 = vpop.f32.mrf.mxu2 }
 0x210   :  { %v404_v22 = vadd.f32 %v403_v41, %v2765_v7 }
 0x211   :  { %1763 = vmatmul.msk.f32.gmra.mxu0 %vm531_vm0, %v662_v51 }
 0x217   :  { %v406_v50 = vpop.f32.mrf.mxu2 }
 0x219   :  { %1764 = vmatmul.msk.f32.gmra.mxu0 %vm531_vm0, %v663_v24 }
 0x221   :  { %1765 = vmatmul.msk.f32.gmra.mxu0 %vm531_vm0, %v664_v44  ;;  %v399_v44 = vadd.f32 %v398_v19, %v2765_v7 }
 0x229   :  { %1766 = vmatmul.msk.f32.gmra.mxu0 %vm531_vm0, %v665_v0 }
 0x231   :  { %1767 = vmatmul.msk.f32.gmra.mxu0 %vm531_vm0, %v666_v61 }
 0x239   :  { %1768 = vmatmul.msk.f32.gmra.mxu0 %vm531_vm0, %v667_v33  ;;  %v408_v33 = vpop.f32.mrf.mxu2 }
 0x241   :  { %1769 = vmatmul.msk.f32.gmra.mxu0 %vm531_vm0, %v668_v45 }
 0x249   :  { %1770 = vmatmul.msk.f32.gmra.mxu0 %vm531_vm0, %v669_v52  ;;  %v2097_v52 = vld [vmem:[%s3167_s6 + $0x8] sm:$0xff] }
 0x251   :  { %1771 = vmatmul.msk.f32.gmra.mxu0 %vm531_vm0, %v670_v49  ;;  %v2098_v49 = vld [vmem:[%s3167_s6 + $0x10] sm:$0xff] }
 0x252   :  { %908 = vmatpush.bf16.msrb.mxu1 %v2098_v49 }
 0x256   :  { %909 = vmatpush.bf16.msrb.mxu1 %v2097_v52  ;;  %v1905_v52 = vld [vmem:[%s3169_s10 + $0xc0] sm:$0xf] }
 0x259   :  { %1772 = vmatmul.msk.f32.gmra.mxu0 %vm531_vm0, %v671_v53 }
 0x25a   :  { %910 = vmatpush.bf16.msrb.mxu1 %v2096_v46  ;;  %v1907_v46 = vld [vmem:[%s3169_s10 + $0xd0] sm:$0xf0] }
 0x25c   :  { %v746_v36 = vpop.f32.mrf.mxu0 }
 0x25d   :  { %v800_v55 = vmul.f32 %v746_v36, %v382_v9  ;;  %v407_v9 = vadd.f32 %v406_v50, %v2765_v7 }
 0x261   :  { %1773 = vmatmul.msk.f32.gmra.mxu0 %vm531_vm0, %v672_v37  ;;  %v402_v37 = vadd.f32 %v401_v28, %v2765_v7 }
 0x266   :  { %v749_v59 = vpop.f32.mrf.mxu0 }
 0x267   :  { %v801_v42 = vmul.f32 %v749_v59, %v384_v35 }
 0x269   :  { %1774 = vmatmul.msk.f32.gmra.mxu0 %vm531_vm0, %v673_v29  ;;  %v411_v29 = vpop.f32.mrf.mxu2 }
 0x26a   :  { %v412_v56 = vadd.f32 %v411_v29, %v2765_v7  ;;  %v2128_v29 = vld [vmem:[%s3169_s10 + $0xc4] sm:$0xf] }
 0x26e   :  { %v752_v62 = vpop.f32.mrf.mxu0 }
 0x26f   :  { %v802_v1 = vmul.f32 %v752_v62, %v387_v60 }
 0x271   :  { %v818_v10 = vadd.f32 %v802_v1, %v800_v55  ;;  %v413_v16 = vpop.f32.mrf.mxu2  ;;  %v409_v55 = vadd.f32 %v408_v33, %v2765_v7 }
 0x276   :  { %v755_v4 = vpop.f32.mrf.mxu0 }
 0x277   :  { %v803_v23 = vmul.f32 %v755_v4, %v389_v3 }
 0x279   :  { %v826_v8 = vadd.f32 %v803_v23, %v801_v42  ;;  %v416_v51 = vpop.f32.mrf.mxu2  ;;  %v414_v42 = vadd.f32 %v413_v16, %v2765_v7  ;;  %v1913_v16 = vld [vmem:[%s3169_s10 + $0xc8] sm:$0xf] }
 0x27a   :  { %v417_v57 = vadd.f32 %v416_v51, %v2765_v7  ;;  %v1910_v51 = vor.u32 %v2128_v29, %v1907_v46  ;;  %v2110_v29 = vld [vmem:[%s3169_s10 + $0x2c] sm:$0xf0]  ;;  %v1827_v46 = vld [vmem:[%s3169_s10 + $0x30] sm:$0xf0] }
 0x27e   :  { %v758_v18 = vpop.f32.mrf.mxu0 }
 0x27f   :  { %v804_v20 = vmul.f32 %v758_v18, %v392_v17 }
 0x281   :  { %v819_v21 = vadd.f32 %v818_v10, %v804_v20  ;;  %v418_v47 = vpop.f32.mrf.mxu2 }
 0x282   :  { %v419_v10 = vadd.f32 %v418_v47, %v2765_v7  ;;  %v1889_v47 = vld [vmem:[%s3169_s10 + $0xa0] sm:$0xf] }
 0x286   :  { %v761_v26 = vpop.f32.mrf.mxu0 }
 0x287   :  { %v805_v27 = vmul.f32 %v761_v26, %v394_v11 }
 0x289   :  { %v827_v13 = vadd.f32 %v826_v8, %v805_v27  ;;  %v421_v63 = vpop.f32.mrf.mxu2 }
 0x28a   :  { %v422_v2 = vadd.f32 %v421_v63, %v2765_v7  ;;  %v1891_v63 = vld [vmem:[%s3169_s10 + $0xb0] sm:$0xf0] }
 0x28e   :  { %v764_v30 = vpop.f32.mrf.mxu0 }
 0x28f   :  { %v806_v34 = vmul.f32 %v764_v30, %v397_v14  ;;  %v2170_v14 = vld [vmem:[%s3168_s7] ss:$0 sm:$0xff] }
 0x291   :  { %v820_v40 = vadd.f32 %v819_v21, %v806_v34  ;;  %v423_v5 = vpop.f32.mrf.mxu2 }
 0x292   :  { %v424_v19 = vadd.f32 %v423_v5, %v2765_v7 }
 0x296   :  { %v767_v61 = vpop.f32.mrf.mxu0 }
 0x297   :  { %v807_v45 = vmul.f32 %v767_v61, %v399_v44  ;;  %v2226_v61 = vmov 128.0  }
 0x298   :  { %2216 = vrcp.f32 %v2226_v61 }
 0x299   :  { %v828_v48 = vadd.f32 %v827_v13, %v807_v45 }
 0x29e   :  { %v770_v6 = vpop.f32.mrf.mxu0  ;;  %v2217_v45 = vpop.eup %2216 }
 0x29f   :  { %v808_v12 = vmul.f32 %v770_v6, %v402_v37  ;;  %v1921_v37 = vld [vmem:[%s3169_s10 + $0xe0] sm:$0xf]  ;;  %v1923_v6 = vld [vmem:[%s3169_s10 + $0xf0] sm:$0xf0]  ;;  %vm928_vm1 = vweird.f32 %v2217_v45 }
 0x2a1   :  { %v821_v24 = vadd.f32 %v820_v40, %v808_v12  ;;  %v1929_v12 = vld [vmem:[%s3169_s10 + $0xe8] sm:$0xf] }
 0x2a6   :  { %v773_v0 = vpop.f32.mrf.mxu0 }
 0x2a7   :  { %v809_v36 = vmul.f32 %v773_v0, %v404_v22  ;;  %v1897_v22 = vld [vmem:[%s3169_s10 + $0xa8] sm:$0xf] }
 0x2a9   :  { %v829_v60 = vadd.f32 %v828_v48, %v809_v36  ;;  %v924_v48 = vmul.f32 128.0, %v2217_v45 }
 0x2ab   :  { %v925_v49 = vsub.f32 1.0, %v924_v48 }
 0x2ad   :  { %v926_v36 = vmul.f32 %v2217_v45, %v925_v49 }
 0x2ae   :  { %v776_v53 = vpop.f32.mrf.mxu0 }
 0x2af   :  { %v810_v35 = vmul.f32 %v776_v53, %v407_v9  ;;  %v2130_v53 = vld [vmem:[%s3169_s10 + $0xcc] sm:$0xf0]  ;;  %v2127_v9 = vld [vmem:[%s3169_s10 + $0xb4] sm:$0xf0] }
 0x2b1   :  { %v822_v3 = vadd.f32 %v821_v24, %v810_v35  ;;  %v2135_v24 = vld [vmem:[%s3169_s10 + $0xf4] sm:$0xf0]  ;;  %v1873_v35 = vld [vmem:[%s3169_s10 + $0x80] sm:$0xf] }
 0x2b2   :  { %v1930_v33 = vor.u32 %v2135_v24, %v1929_v12  ;;  %v1899_v12 = vld [vmem:[%s3169_s10 + $0xb8] sm:$0xf0] }
 0x2b4   :  { %1209 = vmatpush.bf16.msra.mxu0 %v1930_v33  ;;  %v2115_v33 = vld [vmem:[%s3169_s10 + $0x54] sm:$0xf0] }
 0x2b6   :  { %v779_v43 = vpop.f32.mrf.mxu0 }
 0x2b7   :  { %v811_v59 = vmul.f32 %v779_v43, %v409_v55  ;;  %v1906_v43 = vor.u32 %v2130_v53, %v1905_v52  ;;  %v1825_v52 = vld [vmem:[%s3169_s10 + $0x20] sm:$0xf] }
 0x2b9   :  { %v830_v4 = vadd.f32 %v829_v60, %v811_v59  ;;  %v2122_v59 = vld [vmem:[%s3169_s10 + $0x8c] sm:$0xf0]  ;;  %v1881_v60 = vld [vmem:[%s3169_s10 + $0x88] sm:$0xf] }
 0x2be   :  { %v782_v38 = vpop.f32.mrf.mxu0 }
 0x2bf   :  { %v812_v62 = vmul.f32 %v782_v38, %v412_v56  ;;  %v2131_v38 = vld [vmem:[%s3169_s10 + $0xd4] sm:$0xf0] }
 0x2c1   :  { %v823_v17 = vadd.f32 %v822_v3, %v812_v62  ;;  %v2123_v62 = vld [vmem:[%s3169_s10 + $0x94] sm:$0xf0]  ;;  %v1857_v3 = vld [vmem:[%s3169_s10 + $0x60] sm:$0xf] }
 0x2c2   :  { %v1882_v5 = vor.u32 %v2123_v62, %v1881_v60  ;;  %v2113_v62 = vld [vmem:[%s3169_s10 + $0x4c] sm:$0xf] }
 0x2c6   :  { %v785_v39 = vpop.f32.mrf.mxu0 }
 0x2c7   :  { %v813_v1 = vmul.f32 %v785_v39, %v414_v42  ;;  %v1914_v39 = vor.u32 %v2131_v38, %v1913_v16  ;;  %v2120_v42 = vld [vmem:[%s3169_s10 + $0x84] sm:$0xf]  ;;  %v1826_v16 = vor.u32 %v2110_v29, %v1825_v52 }
 0x2c8   :  { %v2164_v52 = vld [vmem:[%s3172_s12 + $0xe0] sm:$0xff] }
 0x2c9   :  { %v831_v18 = vadd.f32 %v830_v4, %v813_v1  ;;  %1210 = vmatpush.bf16.msra.mxu0 %v1914_v39  ;;  %v927_v1 = vadd.f32 %v2217_v45, %v926_v36  ;;  %v2118_v4 = vld [vmem:[%s3169_s10 + $0x6c] sm:$0xf0]  ;;  %v1883_v39 = vld [vmem:[%s3169_s10 + $0x98] sm:$0xf0]  ;;  %v1809_v36 = vld [vmem:[%s3169_s10] sm:$0xf] }
 0x2ce   :  { %v788_v54 = vpop.f32.mrf.mxu0 }
 0x2cf   :  { %v814_v23 = vmul.f32 %v788_v54, %v417_v57  ;;  %v2126_v54 = vld [vmem:[%s3169_s10 + $0xac] sm:$0xf0]  ;;  %v1875_v57 = vld [vmem:[%s3169_s10 + $0x90] sm:$0xf0] }
 0x2d0   :  { %v1890_v55 = vor.u32 %v2126_v54, %v1889_v47  ;;  %v2117_v54 = vld [vmem:[%s3169_s10 + $0x6c] sm:$0xf] }
 0x2d1   :  { %v824_v25 = vadd.f32 %v823_v17, %v814_v23  ;;  %v2116_v23 = vld [vmem:[%s3169_s10 + $0x64] sm:$0xf]  ;;  %v1865_v17 = vld [vmem:[%s3169_s10 + $0x68] sm:$0xf] }
 0x2d6   :  { %v791_v58 = vpop.f32.mrf.mxu0 }
 0x2d7   :  { %v815_v8 = vmul.f32 %v791_v58, %v419_v10  ;;  %v2124_v58 = vld [vmem:[%s3169_s10 + $0xa4] sm:$0xf]  ;;  %v1874_v10 = vor.u32 %v2122_v59, %v1873_v35  ;;  %v1811_v59 = vld [vmem:[%s3169_s10 + $0x10] sm:$0xf0] }
 0x2d8   :  { %v1894_v56 = vor.u32 %v2124_v58, %v1891_v63  ;;  %v1867_v58 = vld [vmem:[%s3169_s10 + $0x78] sm:$0xf0]  ;;  %v2104_v35 = vld [vmem:[%s3169_s10 + $0x4] sm:$0xf] }
 0x2d9   :  { %v832_v11 = vadd.f32 %v831_v18, %v815_v8  ;;  %v1859_v8 = vld [vmem:[%s3169_s10 + $0x70] sm:$0xf0]  ;;  %v2119_v18 = vld [vmem:[%s3169_s10 + $0x74] sm:$0xf0]  ;;  %v1870_v63 = vor.u32 %v2117_v54, %v1867_v58  ;;  %v1814_v60 = vor.u32 %v2104_v35, %v1811_v59  ;;  %v2172_v58 = vld [vmem:[%s3187_s21] ss:$0 sm:$0xff] }
 0x2da   :  { %v2162_v35 = vld [vmem:[%s3172_s12 + $0xd0] sm:$0xff]  ;;  %v2139_v59 = vld [vmem:[%s3172_s12 + $0x18] sm:$0xff] }
 0x2de   :  { %v794_v15 = vpop.f32.mrf.mxu0 }
 0x2df   :  { %v816_v20 = vmul.f32 %v794_v15, %v422_v2  ;;  %v1898_v15 = vor.u32 %v2127_v9, %v1897_v22  ;;  %v1878_v2 = vor.u32 %v2120_v42, %v1875_v57  ;;  %v1833_v22 = vld [vmem:[%s3169_s10 + $0x28] sm:$0xf]  ;;  %v2111_v9 = vld [vmem:[%s3169_s10 + $0x34] sm:$0xf0] }
 0x2e1   :  { %v825_v27 = vadd.f32 %v824_v25, %v816_v20  ;;  %1211 = vmatpush.bf16.msra.mxu0 %v1898_v15  ;;  %v1858_v20 = vor.u32 %v2118_v4, %v1857_v3  ;;  %v1866_v25 = vor.u32 %v2119_v18, %v1865_v17  ;;  %v2106_v15 = vld [vmem:[%s3169_s10 + $0xc] sm:$0xf0]  ;;  %v1817_v3 = vld [vmem:[%s3169_s10 + $0x8] sm:$0xf]  ;;  %v2107_v4 = vld [vmem:[%s3169_s10 + $0x14] sm:$0xf0] }
 0x2e2   :  { %v1810_v57 = vor.u32 %v2106_v15, %v1809_v36  ;;  %v2105_v18 = vld [vmem:[%s3169_s10 + $0xc] sm:$0xf]  ;;  %v2163_v36 = vld [vmem:[%s3172_s12 + $0xd8] sm:$0xff]  ;;  %v2154_v15 = vld [vmem:[%s3172_s12 + $0x90] sm:$0xff] }
 0x2e5   :  { %1212 = vmatpush.bf16.msra.mxu0 %v1882_v5  ;;  %v1835_v5 = vld [vmem:[%s3169_s10 + $0x38] sm:$0xf0] }
 0x2e6   :  { %v797_v21 = vpop.f32.mrf.mxu0 }
 0x2e7   :  { %v817_v26 = vmul.f32 %v797_v21, %v424_v19  ;;  %v2907_v19 = vsel %vm928_vm1, %v2217_v45, %v927_v1  ;;  %v1862_v21 = vor.u32 %v2116_v23, %v1859_v8  ;;  %v1851_v1 = vld [vmem:[%s3169_s10 + $0x58] sm:$0xf0]  ;;  %v1818_v8 = vor.u32 %v2107_v4, %v1817_v3  ;;  %v2145_v3 = vld [vmem:[%s3172_s12 + $0x48] sm:$0xff]  ;;  %v2136_v4 = vld [vmem:[%s3172_s12] sm:$0xff] }
 0x2e9   :  { %v833_v28 = vadd.f32 %v832_v11, %v817_v26  ;;  %v1841_v11 = vld [vmem:[%s3169_s10 + $0x40] sm:$0xf]  ;;  %v2114_v26 = vld [vmem:[%s3169_s10 + $0x4c] sm:$0xf0]  ;;  %1213 = vmatpush.bf16.msra.mxu0 %v1866_v25 }
 0x2eb   :  { %v834_v13 = vpack.c.bf16 %v833_v28, %v825_v27  ;;  %v2112_v28 = vld [vmem:[%s3169_s10 + $0x44] sm:$0xf] }
 0x2ed   :  { %911 = vmatmul.bf16.vlgmr.msrb.gmra.mxu1 %v834_v13  ;;  %v1843_v13 = vld [vmem:[%s3169_s10 + $0x50] sm:$0xf0] }
 0x36a   :  { %v912_v30 = vpop.f32.mrf.mxu1 }
 0x36b   :  { %v913_v34 = vadd.f32 %v2170_v14, %v912_v30  ;;  %v1842_v30 = vor.u32 %v2114_v26, %v1841_v11  ;;  %v2159_v11 = vld [vmem:[%s3172_s12 + $0xb8] sm:$0xff] }
 0x36d   :  { %v2810_v40 = vadd.f32 %v913_v34, %v2397_v31  ;;  %v2134_v31 = vld [vmem:[%s3169_s10 + $0xec] sm:$0xf0] }
 0x36e   :  { %v1922_v50 = vor.u32 %v2134_v31, %v1921_v37  ;;  %v1931_v37 = vld [vmem:[%s3169_s10 + $0xf8] sm:$0xf0] }
 0x36f   :  { %919 = vadd.xlane.f32.xlu0 %v2810_v40 }
 0x370   :  { %1181 = vmatpush.bf16.msrb.mxu2 %v1922_v50 }
 0x372   :  { %v914_v7 = vpop.f32.mrf.mxu1 }
 0x373   :  { %v915_v41 = vadd.f32 %v2170_v14, %v914_v7  ;;  %v1846_v7 = vor.u32 %v2112_v28, %v1843_v13  ;;  %v2143_v28 = vld [vmem:[%s3172_s12 + $0x38] sm:$0xff] }
 0x374   :  { %1182 = vmatpush.bf16.msrb.mxu2 %v1906_v43  ;;  %v2108_v43 = vld [vmem:[%s3169_s10 + $0x24] sm:$0xf]  ;;  %v2151_v13 = vld [vmem:[%s3172_s12 + $0x78] sm:$0xff] }
 0x375   :  { %v2814_v44 = vadd.f32 %v915_v41, %v2402_v32  ;;  %v2132_v32 = vld [vmem:[%s3169_s10 + $0xe4] sm:$0xf]  ;;  %v1830_v38 = vor.u32 %v2108_v43, %v1827_v46 }
 0x376   :  { %v1926_v0 = vor.u32 %v2132_v32, %v1923_v6  ;;  %v2129_v32 = vld [vmem:[%s3169_s10 + $0xcc] sm:$0xf] }
 0x377   :  { %921 = vadd.xlane.f32.xlu0 %v2814_v44  ;;  %v2125_v6 = vld [vmem:[%s3169_s10 + $0xac] sm:$0xf] }
 0x378   :  { %1195 = vmatpush.bf16.msrb.mxu3 %v1926_v0  ;;  %1183 = vmatpush.bf16.msrb.mxu2 %v1890_v55  ;;  %v1902_v24 = vor.u32 %v2125_v6, %v1899_v12  ;;  %v1849_v0 = vld [vmem:[%s3169_s10 + $0x48] sm:$0xf]  ;;  %v2156_v12 = vld [vmem:[%s3172_s12 + $0xa0] sm:$0xff] }
 0x379   :  { %v1850_v53 = vor.u32 %v2115_v33, %v1849_v0 }
 0x37b   :  { %1214 = vmatpush.bf16.msra.mxu0 %v1850_v53 }
 0x37c   :  { %1196 = vmatpush.bf16.msrb.mxu3 %v1910_v51  ;;  %1184 = vmatpush.bf16.msrb.mxu2 %v1874_v10  ;;  %v2121_v51 = vld [vmem:[%s3169_s10 + $0x8c] sm:$0xf] }
 0x37d   :  { %v1886_v47 = vor.u32 %v2121_v51, %v1883_v39  ;;  %v2109_v10 = vld [vmem:[%s3169_s10 + $0x2c] sm:$0xf] }
 0x37e   :  { %v1838_v17 = vor.u32 %v2109_v10, %v1835_v5  ;;  %v2152_v10 = vld [vmem:[%s3172_s12 + $0x80] sm:$0xff]  ;;  %v2137_v5 = vld [vmem:[%s3172_s12 + $0x8] sm:$0xff] }
 0x380   :  { %1197 = vmatpush.bf16.msrb.mxu3 %v1894_v56  ;;  %1185 = vmatpush.bf16.msrb.mxu2 %v1858_v20  ;;  %v1834_v56 = vor.u32 %v2111_v9, %v1833_v22  ;;  %v1819_v20 = vld [vmem:[%s3169_s10 + $0x18] sm:$0xf0] }
 0x381   :  { %v1822_v25 = vor.u32 %v2105_v18, %v1819_v20 }
 0x382   :  { %1215 = vmatpush.bf16.msra.mxu0 %v1834_v56  ;;  %v2148_v56 = vld [vmem:[%s3172_s12 + $0x60] sm:$0xff] }
 0x384   :  { %1198 = vmatpush.bf16.msrb.mxu3 %v1878_v2  ;;  %1186 = vmatpush.bf16.msrb.mxu2 %v1842_v30  ;;  %v1854_v2 = vor.u32 %v2113_v62, %v1851_v1  ;;  %v2138_v62 = vld [vmem:[%s3172_s12 + $0x10] sm:$0xff] }
 0x385   :  { %v2146_v1 = vld [vmem:[%s3172_s12 + $0x50] sm:$0xff] }
 0x386   :  { %1216 = vmatpush.bf16.msra.mxu0 %v1818_v8  ;;  %v1011_v8 = vld [vmem:[%s3173_s11] sm:$0xf] }
 0x387   :  { %v1015_v20 = vperm.slane %v1011_v8, 2 }
 0x388   :  { %1199 = vmatpush.bf16.msrb.mxu3 %v1862_v21  ;;  %1187 = vmatpush.bf16.msrb.mxu2 %v1826_v16 }
 0x38a   :  { %1537 = vmatpush.bf16.msrb.mxu0 %v2159_v11 }
 0x38c   :  { %1200 = vmatpush.bf16.msrb.mxu3 %v1846_v7  ;;  %1188 = vmatpush.bf16.msrb.mxu2 %v1810_v57  ;;  %v2153_v57 = vld [vmem:[%s3172_s12 + $0x88] sm:$0xff] }
 0x390   :  { %1201 = vmatpush.bf16.msrb.mxu3 %v1830_v38  ;;  %1509 = vmatpush.bf16.msra.mxu2 %v2143_v28  ;;  %v2171_v38 = vld [vmem:[%s3170_s8] ss:$0 sm:$0xff]  ;;  %v1013_v28 = vperm.slane %v1011_v8, 0 }
 0x394   :  { %1202 = vmatpush.bf16.msrb.mxu3 %v1814_v60  ;;  %v2161_v60 = vld [vmem:[%s3172_s12 + $0xc8] sm:$0xff] }
 0x398   :  { %1523 = vmatpush.bf16.msra.mxu3 %v2151_v13  ;;  %v1014_v13 = vperm.slane %v1011_v8, 1 }
 0x3e2   :  { %v920_v27 = vpop.xlane.xlu0 %919 }
 0x3e3   :  { %v930_v14 = vmul.f32 %v2907_v19, %v920_v27  ;;  %v2167_v27 = vld [vmem:[%s3172_s12 + $0xf8] sm:$0xff] }
 0x3e5   :  { %v2923_v34 = vsub.f32 %v2810_v40, %v930_v14  ;;  %v2133_v40 = vld [vmem:[%s3169_s10 + $0xec] sm:$0xf]  ;;  %v2158_v14 = vld [vmem:[%s3172_s12 + $0xb0] sm:$0xff] }
 0x3e6   :  { %v1934_v31 = vor.u32 %v2133_v40, %v1931_v37  ;;  %1538 = vmatpush.bf16.msrb.mxu0 %v2158_v14  ;;  %v2157_v37 = vld [vmem:[%s3172_s12 + $0xa8] sm:$0xff] }
 0x3e7   :  { %v934_v41 = vmul.f32 %v2923_v34, %v2923_v34 }
 0x3e8   :  { %1223 = vmatpush.bf16.msra.mxu1 %v1934_v31  ;;  %v2141_v31 = vld [vmem:[%s3172_s12 + $0x28] sm:$0xff] }
 0x3e9   :  { %936 = vadd.xlane.f32.xlu1 %v934_v41  ;;  %v2142_v41 = vld [vmem:[%s3172_s12 + $0x30] sm:$0xff] }
 0x3ea   :  { %v922_v61 = vpop.xlane.xlu0 %921  ;;  %1510 = vmatpush.bf16.msra.mxu2 %v2142_v41  ;;  %1539 = vmatpush.bf16.msrb.mxu0 %v2157_v37 }
 0x3eb   :  { %v931_v45 = vmul.f32 %v2907_v19, %v922_v61  ;;  %v2150_v61 = vld [vmem:[%s3172_s12 + $0x70] sm:$0xff] }
 0x3ec   :  { %1524 = vmatpush.bf16.msra.mxu3 %v2150_v61 }
 0x3ed   :  { %v2929_v48 = vsub.f32 %v2814_v44, %v931_v45  ;;  %v1915_v44 = vld [vmem:[%s3169_s10 + $0xd8] sm:$0xf0] }
 0x3ee   :  { %v1918_v50 = vor.u32 %v2129_v32, %v1915_v44  ;;  %v2149_v32 = vld [vmem:[%s3172_s12 + $0x68] sm:$0xff]  ;;  %1511 = vmatpush.bf16.msra.mxu2 %v2141_v31  ;;  %1540 = vmatpush.bf16.msrb.mxu0 %v2156_v12 }
 0x3ef   :  { %v935_v49 = vmul.f32 %v2929_v48, %v2929_v48 }
 0x3f0   :  { %1224 = vmatpush.bf16.msra.mxu1 %v1918_v50  ;;  %v2165_v50 = vld [vmem:[%s3172_s12 + $0xe8] sm:$0xff]  ;;  %1525 = vmatpush.bf16.msra.mxu3 %v2149_v32 }
 0x3f1   :  { %938 = vadd.xlane.f32.xlu1 %v935_v49  ;;  %v2166_v49 = vld [vmem:[%s3172_s12 + $0xf0] sm:$0xff] }
 0x3f4   :  { %1225 = vmatpush.bf16.msra.mxu1 %v1902_v24  ;;  %1526 = vmatpush.bf16.msra.mxu3 %v2148_v56 }
 0x3f8   :  { %1226 = vmatpush.bf16.msra.mxu1 %v1886_v47 }
 0x3fc   :  { %1227 = vmatpush.bf16.msra.mxu1 %v1870_v63 }
 0x400   :  { %1228 = vmatpush.bf16.msra.mxu1 %v1854_v2  ;;  %v2160_v2 = vld [vmem:[%s3172_s12 + $0xc0] sm:$0xff] }
 0x404   :  { %1229 = vmatpush.bf16.msra.mxu1 %v1838_v17 }
 0x408   :  { %1230 = vmatpush.bf16.msra.mxu1 %v1822_v25 }
 0x40c   :  { %1551 = vmatpush.bf16.msrb.mxu1 %v2167_v27 }
 0x410   :  { %1552 = vmatpush.bf16.msrb.mxu1 %v2166_v49 }
 0x414   :  { %1553 = vmatpush.bf16.msrb.mxu1 %v2165_v50 }
 0x418   :  { %1554 = vmatpush.bf16.msrb.mxu1 %v2164_v52 }
 0x41c   :  { %1555 = vmatpush.bf16.msrb.mxu1 %v2163_v36 }
 0x420   :  { %1556 = vmatpush.bf16.msrb.mxu1 %v2162_v35 }
 0x424   :  { %1557 = vmatpush.bf16.msrb.mxu1 %v2161_v60 }
 0x428   :  { %1558 = vmatpush.bf16.msrb.mxu1 %v2160_v2 }
 0x45c   :  { %v937_v55 = vpop.xlane.xlu1 %936 }
 0x45d   :  { %v940_v42 = vmul.f32 %v937_v55, %v2907_v19  ;;  %v2140_v55 = vld [vmem:[%s3172_s12 + $0x20] sm:$0xff] }
 0x45e   :  { %1512 = vmatpush.bf16.msra.mxu2 %v2140_v55 }
 0x45f   :  { %v942_v23 = vadd.f32 1e-05, %v940_v42  ;;  %v2147_v42 = vld [vmem:[%s3172_s12 + $0x58] sm:$0xff] }
 0x460   :  { %1527 = vmatpush.bf16.msra.mxu3 %v2147_v42 }
 0x461   :  { %2218 = vrsqrt.f32 %v942_v23  ;;  %vm950_vm3 = vweird.f32 %v942_v23 }
 0x462   :  { %1513 = vmatpush.bf16.msra.mxu2 %v2139_v59 }
 0x464   :  { %v939_v21 = vpop.xlane.xlu1 %938  ;;  %1528 = vmatpush.bf16.msra.mxu3 %v2146_v1 }
 0x465   :  { %v941_v26 = vmul.f32 %v939_v21, %v2907_v19  ;;  %v1016_v21 = vperm.slane %v1011_v8, 3 }
 0x466   :  { %1514 = vmatpush.bf16.msra.mxu2 %v2138_v62 }
 0x467   :  { %v2219_v30 = vpop.eup %2218  ;;  %v943_v7 = vadd.f32 1e-05, %v941_v26 }
 0x468   :  { %v945_v45 = vmul.f32 %v2219_v30, %v942_v23  ;;  %vm951_vm2 = vweird.f32 %v2219_v30  ;;  %1529 = vmatpush.bf16.msra.mxu3 %v2145_v3  ;;  %v2144_v23 = vld [vmem:[%s3172_s12 + $0x40] sm:$0xff] }
 0x469   :  { %2220 = vrsqrt.f32 %v943_v7  ;;  %vm952_vm4 = vmor %vm950_vm3, %vm951_vm2  ;;  %vm960_vm6 = vweird.f32 %v943_v7 }
 0x46a   :  { %v946_v40 = vmul.f32 %v2219_v30, %v945_v45  ;;  %1515 = vmatpush.bf16.msra.mxu2 %v2137_v5 }
 0x46c   :  { %v947_v44 = vmul.f32 0.5, %v946_v40  ;;  %1530 = vmatpush.bf16.msra.mxu3 %v2144_v23 }
 0x46e   :  { %v948_v6 = vsub.f32 1.5, %v947_v44  ;;  %1516 = vmatpush.bf16.msra.mxu2 %v2136_v4 }
 0x46f   :  { %v2221_v24 = vpop.eup %2220 }
 0x470   :  { %v949_v0 = vmul.f32 %v2219_v30, %v948_v6  ;;  %v955_v33 = vmul.f32 %v2221_v24, %v943_v7  ;;  %vm961_vm5 = vweird.f32 %v2221_v24 }
 0x471   :  { %vm962_vm7 = vmor %vm960_vm6, %vm961_vm5 }
 0x472   :  { %v956_v53 = vmul.f32 %v2221_v24, %v955_v33  ;;  %v953_v29 = vsel %vm952_vm4, %v2219_v30, %v949_v0 }
 0x473   :  { %v964_v16 = vmul.f32 %v953_v29, %v2923_v34 }
 0x474   :  { %v957_v43 = vmul.f32 0.5, %v956_v53 }
 0x475   :  { %v970_v54 = vmul.f32 %v2171_v38, %v964_v16 }
 0x476   :  { %v958_v46 = vsub.f32 1.5, %v957_v43 }
 0x477   :  { %v3075_v22 = vadd.f32 %v2172_v58, %v970_v54 }
 0x478   :  { %v959_v51 = vmul.f32 %v2221_v24, %v958_v46  ;;  %v2173_v46 = vld [vmem:[%s3174_s13] ss:$0 sm:$0xff] }
 0x47a   :  { %v963_v39 = vsel %vm962_vm7, %v2221_v24, %v959_v51 }
 0x47b   :  { %v965_v47 = vmul.f32 %v963_v39, %v2929_v48  ;;  %v2155_v48 = vld [vmem:[%s3172_s12 + $0x98] sm:$0xff] }
 0x47c   :  { %1541 = vmatpush.bf16.msrb.mxu0 %v2155_v48 }
 0x47d   :  { %v971_v63 = vmul.f32 %v2171_v38, %v965_v47 }
 0x47f   :  { %v3077_v9 = vadd.f32 %v2172_v58, %v971_v63 }
 0x480   :  { %1542 = vmatpush.bf16.msrb.mxu0 %v2154_v15 }
 0x481   :  { %v978_v34 = vpack.c.bf16 %v3077_v9, %v3075_v22 }
 0x483   :  { %1189 = vmatmul.bf16.vlgmr.msrb.gmra.mxu2 %v978_v34  ;;  %1203 = vmatmul.bf16.vlgmr.msrb.gmra.mxu3 %v978_v34 }
 0x484   :  { %1217 = vmatmul.bf16.vlgmr.msra.gmra.mxu0 %v978_v34  ;;  %1231 = vmatmul.bf16.vlgmr.msra.gmra.mxu1 %v978_v34 }
 0x485   :  { %1543 = vmatpush.bf16.msrb.mxu0 %v2153_v57 }
 0x489   :  { %1544 = vmatpush.bf16.msrb.mxu0 %v2152_v10 }
 0x501   :  { %v1218_v17 = vpop.f32.mrf.mxu0  ;;  %v1232_v18 = vpop.f32.mrf.mxu1 }
 0x502   :  { %v1219_v26 = vadd.f32 %v1218_v17, %v1015_v20  ;;  %v1233_v27 = vadd.f32 %v1232_v18, %v1016_v21 }
 0x504   :  { %v1239_v61 = vmax.f32 %v1219_v26, 0.0  ;;  %v1240_v45 = vmax.f32 %v1233_v27, 0.0 }
 0x506   :  { %v1190_v25 = vpop.f32.mrf.mxu2  ;;  %v1204_v11 = vpop.f32.mrf.mxu3 }
 0x507   :  { %v1191_v37 = vadd.f32 %v1190_v25, %v1013_v28  ;;  %v1205_v31 = vadd.f32 %v1204_v11, %v1014_v13 }
 0x509   :  { %v1220_v14 = vpop.f32.mrf.mxu0  ;;  %v1234_v30 = vpop.f32.mrf.mxu1  ;;  %v1237_v0 = vmax.f32 %v1191_v37, 0.0  ;;  %v1238_v33 = vmax.f32 %v1205_v31, 0.0 }
 0x50a   :  { %v1221_v7 = vadd.f32 %v1220_v14, %v1015_v20  ;;  %v1235_v41 = vadd.f32 %v1234_v30, %v1016_v21  ;;  %v2174_v14 = vld [vmem:[%s3175_s14] ss:$0 sm:$0xff] }
 0x50c   :  { %v1243_v49 = vmax.f32 %v1221_v7, 0.0  ;;  %v1244_v40 = vmax.f32 %v1235_v41, 0.0 }
 0x50e   :  { %v1247_v32 = vpack.c.bf16 %v1243_v49, %v1239_v61  ;;  %v1248_v44 = vpack.c.bf16 %v1244_v40, %v1240_v45  ;;  %v1192_v50 = vpop.f32.mrf.mxu2  ;;  %v1206_v6 = vpop.f32.mrf.mxu3 }
 0x50f   :  { %v1193_v12 = vadd.f32 %v1192_v50, %v1013_v28  ;;  %v1207_v24 = vadd.f32 %v1206_v6, %v1014_v13 }
 0x510   :  { %1545 = vmatmul.bf16.vlgmr.msrb.gmra.mxu0 %v1247_v32  ;;  %1559 = vmatmul.bf16.vlgmr.msrb.gmra.mxu1 %v1248_v44 }
 0x511   :  { %v1241_v52 = vmax.f32 %v1193_v12, 0.0  ;;  %v1242_v53 = vmax.f32 %v1207_v24, 0.0 }
 0x513   :  { %v1245_v29 = vpack.c.bf16 %v1241_v52, %v1237_v0  ;;  %v1246_v43 = vpack.c.bf16 %v1242_v53, %v1238_v33 }
 0x515   :  { %1517 = vmatmul.bf16.vlgmr.msra.gmra.mxu2 %v1245_v29  ;;  %1531 = vmatmul.bf16.vlgmr.msra.gmra.mxu3 %v1246_v43 }
 0x58d   :  { %v1546_v39 = vpop.f32.mrf.mxu0  ;;  %v1560_v54 = vpop.f32.mrf.mxu1 }
 0x595   :  { %v1548_v15 = vpop.f32.mrf.mxu0  ;;  %v1562_v59 = vpop.f32.mrf.mxu1 }
 0x598   :  { %v1518_v16 = vpop.f32.mrf.mxu2  ;;  %v1532_v38 = vpop.f32.mrf.mxu3 }
 0x599   :  { %v1519_v51 = vadd.f32 %v2173_v46, %v1518_v16 }
 0x59b   :  { %v1533_v47 = vadd.f32 %v1532_v38, %v1519_v51 }
 0x59d   :  { %v1547_v58 = vadd.f32 %v1546_v39, %v1533_v47 }
 0x59f   :  { %v1561_v63 = vadd.f32 %v1560_v54, %v1547_v58 }
 0x5a0   :  { %v1520_v34 = vpop.f32.mrf.mxu2  ;;  %v1534_v55 = vpop.f32.mrf.mxu3 }
 0x5a1   :  { %v1521_v48 = vadd.f32 %v2173_v46, %v1520_v34  ;;  %v1565_v36 = vadd.f32 %v1561_v63, %v3075_v22 }
 0x5a3   :  { %v1535_v56 = vadd.f32 %v1534_v55, %v1521_v48  ;;  %1567 = vadd.xlane.f32.xlu2 %v1565_v36 }
 0x5a5   :  { %v1549_v35 = vadd.f32 %v1548_v15, %v1535_v56 }
 0x5a7   :  { %v1563_v42 = vadd.f32 %v1562_v59, %v1549_v35 }
 0x5a9   :  { %v1566_v57 = vadd.f32 %v1563_v42, %v3077_v9 }
 0x5ab   :  { %1569 = vadd.xlane.f32.xlu2 %v1566_v57 }
 0x616   :  { %v1568_v60 = vpop.xlane.xlu2 %1567 }
 0x617   :  { %v1571_v62 = vmul.f32 %v1568_v60, %v2907_v19 }
 0x619   :  { %v1573_v1 = vsub.f32 %v1565_v36, %v1571_v62 }
 0x61b   :  { %v1575_v10 = vmul.f32 %v1573_v1, %v1573_v1 }
 0x61d   :  { %1577 = vadd.xlane.f32.xlu0 %v1575_v10 }
 0x61e   :  { %v1570_v2 = vpop.xlane.xlu2 %1569 }
 0x61f   :  { %v1572_v5 = vmul.f32 %v1570_v2, %v2907_v19 }
 0x621   :  { %v1574_v22 = vsub.f32 %v1566_v57, %v1572_v5 }
 0x623   :  { %v1576_v3 = vmul.f32 %v1574_v22, %v1574_v22 }
 0x625   :  { %1579 = vadd.xlane.f32.xlu1 %v1576_v3 }
 0x690   :  { %v1578_v4 = vpop.xlane.xlu0 %1577 }
 0x691   :  { %v1581_v23 = vmul.f32 %v1578_v4, %v2907_v19 }
 0x693   :  { %v1583_v8 = vadd.f32 1e-05, %v1581_v23 }
 0x695   :  { %2222 = vrsqrt.f32 %v1583_v8  ;;  %vm1591_vm9 = vweird.f32 %v1583_v8 }
 0x698   :  { %v1580_v17 = vpop.xlane.xlu1 %1579 }
 0x699   :  { %v1582_v9 = vmul.f32 %v1580_v17, %v2907_v19  ;;  %v2175_v19 = vld [vmem:[%s3176_s15] ss:$0 sm:$0xff] }
 0x69b   :  { %v2223_v18 = vpop.eup %2222  ;;  %v1584_v20 = vadd.f32 1e-05, %v1582_v9 }
 0x69c   :  { %v1586_v21 = vmul.f32 %v2223_v18, %v1583_v8  ;;  %vm1592_vm8 = vweird.f32 %v2223_v18 }
 0x69d   :  { %2224 = vrsqrt.f32 %v1584_v20  ;;  %vm1593_vm10 = vmor %vm1591_vm9, %vm1592_vm8  ;;  %vm1601_vm12 = vweird.f32 %v1584_v20 }
 0x69e   :  { %v1587_v25 = vmul.f32 %v2223_v18, %v1586_v21 }
 0x6a0   :  { %v1588_v11 = vmul.f32 0.5, %v1587_v25 }
 0x6a2   :  { %v1589_v26 = vsub.f32 1.5, %v1588_v11 }
 0x6a3   :  { %v2225_v27 = vpop.eup %2224 }
 0x6a4   :  { %v1590_v28 = vmul.f32 %v2223_v18, %v1589_v26  ;;  %v1596_v13 = vmul.f32 %v2225_v27, %v1584_v20  ;;  %vm1602_vm11 = vweird.f32 %v2225_v27 }
 0x6a5   :  { %vm1603_vm13 = vmor %vm1601_vm12, %vm1602_vm11 }
 0x6a6   :  { %v1594_v30 = vsel %vm1593_vm10, %v2223_v18, %v1590_v28  ;;  %v1597_v7 = vmul.f32 %v2225_v27, %v1596_v13 }
 0x6a7   :  { %v1605_v41 = vmul.f32 %v1594_v30, %v1573_v1 }
 0x6a8   :  { %v1598_v61 = vmul.f32 0.5, %v1597_v7 }
 0x6a9   :  { %v1611_v45 = vmul.f32 %v2174_v14, %v1605_v41 }
 0x6aa   :  { %v1599_v49 = vsub.f32 1.5, %v1598_v61 }
 0x6ab   :  { %v1617_v40 = vadd.f32 %v2175_v19, %v1611_v45 }
 0x6ac   :  { %v1600_v37 = vmul.f32 %v2225_v27, %v1599_v49 }
 0x6ad   :  { %1619 = vst [vmem:[%s3177_s18] sm:$0xff] %v1617_v40 }
 0x6ae   :  { %v1604_v31 = vsel %vm1603_vm13, %v2225_v27, %v1600_v37 }
 0x6af   :  { %v1606_v32 = vmul.f32 %v1604_v31, %v1574_v22 }
 0x6b1   :  { %v1612_v44 = vmul.f32 %v2174_v14, %v1606_v32 }
 0x6b3   :  { %v1618_v50 = vadd.f32 %v2175_v19, %v1612_v44 }
 0x6b5   :  { %1620 = vst [vmem:[%s3177_s18 + $0x8] sm:$0xff] %v1618_v50 }

</bundles_post_ra>
